<compile_context>
chip_gen: v7x
topology: tpu7x:2x2x1
jax: 0.10.0
libtpu: 0.0.40
codegen_flags: <defaults>
</compile_context>

<pallas_src>
import functools

import numpy as np
import jax
import jax.numpy as jnp
from jax import lax
from jax.experimental import pallas as pl
from jax.experimental.pallas import tpu as pltpu


# ---------------------------------------------------------------------------
# Fused Pallas kernel: (conv1+ReLU) -> (conv2+ReLU) -> (fc1+ReLU) -> fc2
# Every layer is a dense 2D matmul on VMEM-resident operands; activations
# never leave VMEM.  `refs` = [x, (w, b) * n_layers, out].
# ---------------------------------------------------------------------------
def fused_overlap_head_kernel(*refs, n_layers, relu_mask):
    x_ref = refs[0]
    out_ref = refs[1 + 2 * n_layers]
    x = x_ref[...]                                           # (PB, D0)
    for l in range(n_layers):
        w_ref = refs[1 + 2 * l]
        b_ref = refs[2 + 2 * l]
        x = jnp.dot(x, w_ref[...], preferred_element_type=jnp.float32)
        x = x + b_ref[...]
        if relu_mask[l]:
            x = jnp.maximum(x, 0.0)
    out_ref[...] = x                                         # (PB, F_out) logits


# ---------------------------------------------------------------------------
# Head forward: pair construction (glue) in plain JAX, single fused pallas_call
# ---------------------------------------------------------------------------
def overlap_head_forward(hand_features, body_features, params, pair_block=128):
    """hand/body features: (n, C, H, W) NCHW (PyTorch layout)."""
    nh, C, H, W = hand_features.shape
    nb = body_features.shape[0]
    P = nh * (nb + 1)

    # ----- build (hand_i, partner_j) pairs, NHWC-flattened (tiny glue) -------
    hand = jnp.transpose(hand_features, (0, 2, 3, 1))        # (nh, H, W, C)
    body = jnp.transpose(body_features, (0, 2, 3, 1))        # (nb, H, W, C)
    partners = jnp.concatenate(
        [jnp.broadcast_to(body[None], (nh, nb, H, W, C)), hand[:, None]], axis=1)
    hands_rep = jnp.broadcast_to(hand[:, None], (nh, nb + 1, H, W, C))
    pairs = jnp.concatenate([hands_rep, partners], axis=-1)  # (nh, nb+1, H, W, 2C)
    x = pairs.reshape(P, H * W * 2 * C)                      # NHWC flatten per pair

    weights = params["weights"]                              # [(Din, Dout)]
    biases = params["biases"]                                # [(1, Dout)]
    n_layers = len(weights)
    relu_mask = tuple([True] * (n_layers - 1) + [False])
    F_out = weights[-1].shape[1]
    D0 = x.shape[1]

    # ----- tile the pair axis (parallel grid; bounds VMEM for large P) -------
    if P <= pair_block:
        PB, Pg = P, P
    else:
        PB = pair_block                                      # multiple of 8
        Pg = pl.cdiv(P, PB) * PB
        x = jnp.pad(x, ((0, Pg - P), (0, 0)))
    grid = (Pg // PB,)

    in_arrays = [x]
    in_specs = [pl.BlockSpec((PB, D0), lambda p: (p, 0))]
    for w, b in zip(weights, biases):
        in_arrays += [w, b]
        in_specs += [pl.BlockSpec(w.shape, lambda p: (0, 0)),
                     pl.BlockSpec(b.shape, lambda p: (0, 0))]

    out = pl.pallas_call(
        functools.partial(fused_overlap_head_kernel,
                          n_layers=n_layers, relu_mask=relu_mask),
        out_shape=jax.ShapeDtypeStruct((Pg, F_out), jnp.float32),
        grid=grid,
        in_specs=in_specs,
        out_specs=pl.BlockSpec((PB, F_out), lambda p: (p, 0)),
        compiler_params=pltpu.CompilerParams(
            dimension_semantics=("parallel",)),
    )(*in_arrays)

    # (P, 1) -> squeeze(1).unsqueeze(0) per hand + cat  ==  (nh, nb+1)
    return out[:P, 0].reshape(nh, nb + 1)


# ---------------------------------------------------------------------------
# Parameter preparation (done once, outside the forward hot path)
# ---------------------------------------------------------------------------
def unroll_same_conv(w_oihw, b, H, W, pad):
    """Unroll a stride-1 'same' conv into a dense matrix acting on the
    NHWC-flattened feature map:  y_flat = x_flat @ M + b_flat."""
    w = np.asarray(w_oihw, np.float32)                       # (Cout, Cin, KH, KW)
    Cout, Cin, KH, KW = w.shape
    M = np.zeros((H * W * Cin, H * W * Cout), np.float32)
    for ho in range(H):
        for wo in range(W):
            c0 = (ho * W + wo) * Cout
            for kh in range(KH):
                hi = ho + kh - pad
                if not 0 <= hi < H:
                    continue
                for kw in range(KW):
                    wi = wo + kw - pad
                    if not 0 <= wi < W:
                        continue
                    r0 = (hi * W + wi) * Cin
                    M[r0:r0 + Cin, c0:c0 + Cout] = w[:, :, kh, kw].T
    b_flat = np.tile(np.asarray(b, np.float32), H * W).reshape(1, H * W * Cout)
    return jnp.asarray(M), jnp.asarray(b_flat)


def prepare_kernel_params(torch_convs, torch_fcs, H, W):
    weights, biases = [], []
    ch = None
    for (w, b, pad) in torch_convs:                          # OIHW conv weights
        M, bf = unroll_same_conv(w, b, H, W, pad)
        weights.append(M)
        biases.append(bf)
        ch = w.shape[0]
    # fc1: permute so the kernel's NHWC (h, w, c) flatten reproduces PyTorch's
    # NCHW (c, h, w) flatten exactly.
    w0, b0 = torch_fcs[0]
    F1 = w0.shape[0]
    w0k = jnp.transpose(w0.reshape(F1, ch, H, W), (2, 3, 1, 0)).reshape(H * W * ch, F1)
    weights.append(w0k)
    biases.append(jnp.asarray(b0).reshape(1, F1))
    for (w, b) in torch_fcs[1:]:
        weights.append(jnp.asarray(w).T)
        biases.append(jnp.asarray(b).reshape(1, -1))
    return {"weights": weights, "biases": biases}


# ---------------------------------------------------------------------------
# Pure-JAX NCHW reference (PyTorch semantics) for validation
# ---------------------------------------------------------------------------
def build_pairs_nchw(hand_features, body_features):
    nh, C, H, W = hand_features.shape
    nb = body_features.shape[0]
    partners = jnp.concatenate(
        [jnp.broadcast_to(body_features[None], (nh, nb, C, H, W)),
         hand_features[:, None]], axis=1)
    hands_rep = jnp.broadcast_to(hand_features[:, None], (nh, nb + 1, C, H, W))
    pairs = jnp.concatenate([hands_rep, partners], axis=2)
    return pairs.reshape(nh * (nb + 1), 2 * C, H, W)


def reference_forward(hand_features, body_features, torch_convs, torch_fcs):
    nh = hand_features.shape[0]
    nb = body_features.shape[0]
    x = build_pairs_nchw(hand_features, body_features)
    for (w, b, pad) in torch_convs:
        x = lax.conv_general_dilated(
            x, w, (1, 1), [(pad, pad), (pad, pad)],
            dimension_numbers=("NCHW", "OIHW", "NCHW"),
            precision=lax.Precision.HIGHEST)
        x = jnp.maximum(x + b.reshape(1, -1, 1, 1), 0.0)
    x = x.reshape(x.shape[0], -1)
    for k, (w, b) in enumerate(torch_fcs):
        x = jnp.dot(x, w.T, precision=lax.Precision.HIGHEST) + b
        if k < len(torch_fcs) - 1:
            x = jnp.maximum(x, 0.0)
    return x.reshape(nh, nb + 1)


# ---------------------------------------------------------------------------
if __name__ == "__main__":
    key = jax.random.PRNGKey(0)
    num_hands, num_bodies = 2, 3
    C, H, W = 4, 8, 8                       # input ROI feature: (C, H, W)
    conv_dims = [(8, 3, 1), (8, 3, 1)]      # (out_ch, kernel, pad) per conv
    fc_dims = [32, 1]                       # last FC produces the overlap logit

    keys = jax.random.split(key, 16)
    hand_features = jax.random.normal(keys[0], (num_hands, C, H, W), jnp.float32)
    body_features = jax.random.normal(keys[1], (num_bodies, C, H, W), jnp.float32)

    # --- deterministic params in PyTorch layouts -----------------------------
    torch_convs = []
    in_ch = 2 * C
    ki = 2
    for (oc, ks, pad) in conv_dims:
        std = (2.0 / (in_ch * ks * ks)) ** 0.5          # ~ c2_msra_fill
        w = jax.random.normal(keys[ki], (oc, in_ch, ks, ks), jnp.float32) * std
        ki += 1
        b = jax.random.normal(keys[ki], (oc,), jnp.float32) * 0.01
        ki += 1
        torch_convs.append((w, b, pad))
        in_ch = oc
    Cc = in_ch                                          # same-padding convs
    D = Cc * H * W
    torch_fcs = []
    din = D
    for fd in fc_dims:
        lim = (6.0 / (din + fd)) ** 0.5                 # ~ c2_xavier_fill
        w = jax.random.uniform(keys[ki], (fd, din), jnp.float32, -lim, lim)
        ki += 1
        b = jnp.zeros((fd,), jnp.float32)
        torch_fcs.append((w, b))
        din = fd

    # --- one-time weight preprocessing for the fused kernel ------------------
    kernel_params = prepare_kernel_params(torch_convs, torch_fcs, H, W)

    # --- run fused Pallas path ------------------------------------------------
    fwd = jax.jit(overlap_head_forward)
    pred_overlap = fwd(hand_features, body_features, kernel_params)
    pred_overlap = jax.block_until_ready(pred_overlap)
    assert pred_overlap.shape == (num_hands, num_bodies + 1)

    # --- validate against NCHW reference -------------------------------------
    ref = reference_forward(hand_features, body_features, torch_convs, torch_fcs)
    assert jnp.allclose(pred_overlap, ref, rtol=2e-2, atol=2e-2), (pred_overlap, ref)

    # --- training-branch loss (glue, plain JAX): BCE-with-logits -------------
    ioa = jax.random.uniform(keys[ki], (num_hands, num_bodies), jnp.float32)
    ioa_gt = jnp.concatenate([ioa, jnp.ones((num_hands, 1), jnp.float32)], axis=1)
    overlap_gt = (ioa_gt > 0).astype(jnp.float32)
    z, y = pred_overlap, overlap_gt
    bce = jnp.maximum(z, 0) - z * y + jnp.log1p(jnp.exp(-jnp.abs(z)))
    loss = 1.0 * jnp.mean(bce)
    jax.block_until_ready(loss)

    # TODO(synk): inference-only post-processing (Box2BoxTransform deltas,
    # sigmoid gating + scipy linear_sum_assignment Hungarian matching, Instances
    # field writes) has no clean Pallas equivalent and is left to host code.

    print("KERNEL_OK")
</pallas_src>

<mosaic_0001>
module attributes {stable_mosaic.version = 11 : i64} {
  func.func @fused_overlap_head_kernel(%arg0: i32, %arg1: memref<8x512xf32, #tpu.memory_space<vmem>>, %arg2: memref<512x512xf32, #tpu.memory_space<vmem>>, %arg3: memref<1x512xf32, #tpu.memory_space<vmem>>, %arg4: memref<512x512xf32, #tpu.memory_space<vmem>>, %arg5: memref<1x512xf32, #tpu.memory_space<vmem>>, %arg6: memref<512x32xf32, #tpu.memory_space<vmem>>, %arg7: memref<1x32xf32, #tpu.memory_space<vmem>>, %arg8: memref<32x1xf32, #tpu.memory_space<vmem>>, %arg9: memref<1x1xf32, #tpu.memory_space<vmem>>, %arg10: memref<8x1xf32, #tpu.memory_space<vmem>>) attributes {dimension_semantics = [#tpu.dimension_semantics<parallel>], iteration_bounds = array<i64: 1>, scalar_prefetch = 0 : i64, scratch_operands = 0 : i64, tpu.core_type = #tpu.core_type<tc>, window_params = [{transform_indices = @transform_0, window_bounds = array<i64: 8, 512>}, {pipeline_mode = #tpu.pipeline_mode<synchronous>, transform_indices = @transform_1, window_bounds = array<i64: 512, 512>}, {pipeline_mode = #tpu.pipeline_mode<synchronous>, transform_indices = @transform_2, window_bounds = array<i64: 1, 512>}, {pipeline_mode = #tpu.pipeline_mode<synchronous>, transform_indices = @transform_3, window_bounds = array<i64: 512, 512>}, {pipeline_mode = #tpu.pipeline_mode<synchronous>, transform_indices = @transform_4, window_bounds = array<i64: 1, 512>}, {pipeline_mode = #tpu.pipeline_mode<synchronous>, transform_indices = @transform_5, window_bounds = array<i64: 512, 32>}, {pipeline_mode = #tpu.pipeline_mode<synchronous>, transform_indices = @transform_6, window_bounds = array<i64: 1, 32>}, {pipeline_mode = #tpu.pipeline_mode<synchronous>, transform_indices = @transform_7, window_bounds = array<i64: 32, 1>}, {pipeline_mode = #tpu.pipeline_mode<synchronous>, transform_indices = @transform_8, window_bounds = array<i64: 1, 1>}, {transform_indices = @transform_9, window_bounds = array<i64: 8, 1>}]} {
    %c0 = arith.constant 0 : index
    %c0_0 = arith.constant 0 : index
    %0 = vector.load %arg1[%c0, %c0_0] : memref<8x512xf32, #tpu.memory_space<vmem>>, vector<8x512xf32>
    %c0_1 = arith.constant 0 : index
    %c0_2 = arith.constant 0 : index
    %1 = vector.load %arg2[%c0_1, %c0_2] : memref<512x512xf32, #tpu.memory_space<vmem>>, vector<512x512xf32>
    %cst = arith.constant dense<0.000000e+00> : vector<8x512xf32>
    %2 = tpu.matmul %0, %1, %cst {dimension_numbers = #tpu.dot_dimension_numbers<[1], [0], [0], [1], [0, 0, 1, 1], [], []>} : vector<8x512xf32>, vector<512x512xf32>, vector<8x512xf32> -> vector<8x512xf32>
    %c0_3 = arith.constant 0 : index
    %c0_4 = arith.constant 0 : index
    %3 = vector.load %arg3[%c0_3, %c0_4] : memref<1x512xf32, #tpu.memory_space<vmem>>, vector<1x512xf32>
    %4 = vector.broadcast %3 : vector<1x512xf32> to vector<8x512xf32>
    %5 = arith.addf %2, %4 : vector<8x512xf32>
    %cst_5 = arith.constant 0.000000e+00 : f32
    %6 = vector.broadcast %cst_5 : f32 to vector<8x512xf32>
    %7 = arith.maximumf %5, %6 : vector<8x512xf32>
    %c0_6 = arith.constant 0 : index
    %c0_7 = arith.constant 0 : index
    %8 = vector.load %arg4[%c0_6, %c0_7] : memref<512x512xf32, #tpu.memory_space<vmem>>, vector<512x512xf32>
    %cst_8 = arith.constant dense<0.000000e+00> : vector<8x512xf32>
    %9 = tpu.matmul %7, %8, %cst_8 {dimension_numbers = #tpu.dot_dimension_numbers<[1], [0], [0], [1], [0, 0, 1, 1], [], []>} : vector<8x512xf32>, vector<512x512xf32>, vector<8x512xf32> -> vector<8x512xf32>
    %c0_9 = arith.constant 0 : index
    %c0_10 = arith.constant 0 : index
    %10 = vector.load %arg5[%c0_9, %c0_10] : memref<1x512xf32, #tpu.memory_space<vmem>>, vector<1x512xf32>
    %11 = vector.broadcast %10 : vector<1x512xf32> to vector<8x512xf32>
    %12 = arith.addf %9, %11 : vector<8x512xf32>
    %cst_11 = arith.constant 0.000000e+00 : f32
    %13 = vector.broadcast %cst_11 : f32 to vector<8x512xf32>
    %14 = arith.maximumf %12, %13 : vector<8x512xf32>
    %c0_12 = arith.constant 0 : index
    %c0_13 = arith.constant 0 : index
    %15 = vector.load %arg6[%c0_12, %c0_13] : memref<512x32xf32, #tpu.memory_space<vmem>>, vector<512x32xf32>
    %cst_14 = arith.constant dense<0.000000e+00> : vector<8x32xf32>
    %16 = tpu.matmul %14, %15, %cst_14 {dimension_numbers = #tpu.dot_dimension_numbers<[1], [0], [0], [1], [0, 0, 1, 1], [], []>} : vector<8x512xf32>, vector<512x32xf32>, vector<8x32xf32> -> vector<8x32xf32>
    %c0_15 = arith.constant 0 : index
    %c0_16 = arith.constant 0 : index
    %17 = vector.load %arg7[%c0_15, %c0_16] : memref<1x32xf32, #tpu.memory_space<vmem>>, vector<1x32xf32>
    %18 = vector.broadcast %17 : vector<1x32xf32> to vector<8x32xf32>
    %19 = arith.addf %16, %18 : vector<8x32xf32>
    %cst_17 = arith.constant 0.000000e+00 : f32
    %20 = vector.broadcast %cst_17 : f32 to vector<8x32xf32>
    %21 = arith.maximumf %19, %20 : vector<8x32xf32>
    %c0_18 = arith.constant 0 : index
    %c0_19 = arith.constant 0 : index
    %22 = vector.load %arg8[%c0_18, %c0_19] : memref<32x1xf32, #tpu.memory_space<vmem>>, vector<32x1xf32>
    %cst_20 = arith.constant dense<0.000000e+00> : vector<8x1xf32>
    %23 = tpu.matmul %21, %22, %cst_20 {dimension_numbers = #tpu.dot_dimension_numbers<[1], [0], [0], [1], [0, 0, 1, 1], [], []>} : vector<8x32xf32>, vector<32x1xf32>, vector<8x1xf32> -> vector<8x1xf32>
    %c0_21 = arith.constant 0 : index
    %c0_22 = arith.constant 0 : index
    %24 = vector.load %arg9[%c0_21, %c0_22] : memref<1x1xf32, #tpu.memory_space<vmem>>, vector<1x1xf32>
    %25 = vector.broadcast %24 : vector<1x1xf32> to vector<8x1xf32>
    %26 = arith.addf %23, %25 : vector<8x1xf32>
    %c0_23 = arith.constant 0 : index
    %c0_24 = arith.constant 0 : index
    %27 = vector.load %arg10[%c0_23, %c0_24] : memref<8x1xf32, #tpu.memory_space<vmem>>, vector<8x1xf32>
    tpu.vector_store %arg10[%c0_23, %c0_24], %26 {strides = array<i32>} : memref<8x1xf32, #tpu.memory_space<vmem>>, vector<8x1xf32>,
    return
  }
  func.func @transform_0(%arg0: i32) -> (i32, i32) {
    %c0_i32 = arith.constant 0 : i32
    %c0_i32_0 = arith.constant 0 : i32
    return %arg0, %c0_i32 : i32, i32
  }
  func.func @transform_1(%arg0: i32) -> (i32, i32) {
    %c0_i32 = arith.constant 0 : i32
    %c0_i32_0 = arith.constant 0 : i32
    %c0_i32_1 = arith.constant 0 : i32
    return %c0_i32, %c0_i32_0 : i32, i32
  }
  func.func @transform_2(%arg0: i32) -> (i32, i32) {
    %c0_i32 = arith.constant 0 : i32
    %c0_i32_0 = arith.constant 0 : i32
    %c0_i32_1 = arith.constant 0 : i32
    return %c0_i32, %c0_i32_0 : i32, i32
  }
  func.func @transform_3(%arg0: i32) -> (i32, i32) {
    %c0_i32 = arith.constant 0 : i32
    %c0_i32_0 = arith.constant 0 : i32
    %c0_i32_1 = arith.constant 0 : i32
    return %c0_i32, %c0_i32_0 : i32, i32
  }
  func.func @transform_4(%arg0: i32) -> (i32, i32) {
    %c0_i32 = arith.constant 0 : i32
    %c0_i32_0 = arith.constant 0 : i32
    %c0_i32_1 = arith.constant 0 : i32
    return %c0_i32, %c0_i32_0 : i32, i32
  }
  func.func @transform_5(%arg0: i32) -> (i32, i32) {
    %c0_i32 = arith.constant 0 : i32
    %c0_i32_0 = arith.constant 0 : i32
    %c0_i32_1 = arith.constant 0 : i32
    return %c0_i32, %c0_i32_0 : i32, i32
  }
  func.func @transform_6(%arg0: i32) -> (i32, i32) {
    %c0_i32 = arith.constant 0 : i32
    %c0_i32_0 = arith.constant 0 : i32
    %c0_i32_1 = arith.constant 0 : i32
    return %c0_i32, %c0_i32_0 : i32, i32
  }
  func.func @transform_7(%arg0: i32) -> (i32, i32) {
    %c0_i32 = arith.constant 0 : i32
    %c0_i32_0 = arith.constant 0 : i32
    %c0_i32_1 = arith.constant 0 : i32
    return %c0_i32, %c0_i32_0 : i32, i32
  }
  func.func @transform_8(%arg0: i32) -> (i32, i32) {
    %c0_i32 = arith.constant 0 : i32
    %c0_i32_0 = arith.constant 0 : i32
    %c0_i32_1 = arith.constant 0 : i32
    return %c0_i32, %c0_i32_0 : i32, i32
  }
  func.func @transform_9(%arg0: i32) -> (i32, i32) {
    %c0_i32 = arith.constant 0 : i32
    %c0_i32_0 = arith.constant 0 : i32
    return %arg0, %c0_i32 : i32, i32
  }
}

</mosaic_0001>

<bundles_post_ra>
// kernel: squeeze.1
= control target key start
LH: loop header
LB: loop body
LE: loop exit
PB: predicated region body
PF: predicated region fallthrough
CT: control target
= control target key end

     0   :  { %s85_s0 = inlined_call_operand.vmem [shape: f32[8], index: 0, kind: input, shape index: {}]   ;;  %s86_s1 = inlined_call_operand.hbm [shape: f32[2,4], index: 1, kind: output, shape index: {}]  }
   0x1   :  { %v5_v0 = vld [vmem:[%s85_s0] sm:$0x1] }
   0x2   :  { %2 = vsyncpa [#allocation1], 0  ;;  %6 = vst [vmem:[#allocation3] sm:$0x1] %v5_v0  ;;  %vm8_vm0 = vcmask 31744   ;;  %s58_s0 = smov 124  }
   0x3   :  { %s59_s8 = smov [#allocation0]  }
   0x4   :  { %s26_s9 = sshll.u32 %s59_s8, 4  ;;  %s27_s9 = int_to_ptr.vmem [resolvable:$true] %s26_s9 }
   0x5   :  { %s34_s10 = scalar_lea.vmem %s27_s9, 32  ;;  %p39_p1 = scmp.lt.s32.totalorder %s27_s9, %s27_s9 }
   0x6   :  { %p35_p0 = scmp.ne.s32.totalorder %s27_s9, %s34_s10  ;;  %p40_p2 = scmp.lt.s32.totalorder %s34_s10, %s34_s10 }
   0x8   :  { %p41_p3 = por %p40_p2, %p39_p1 }
   0x9   :  { %v10_v1 = vld [vmem:[#allocation3] sm:$0x1]  }
   0xa   :  { %v7_v2 = vld [vmem:[#allocation3] sm:$0x1]   ;;  %11 = vrot.lane.b32.xlu0 %v10_v1, %s58_s0  ;;  %p42_p4 = pnand %p41_p3, %p35_p0 }
   0xb   :  { %9 = vst.msk [vmem:[#allocation2] sm:$0x1] %vm8_vm0, %v7_v2  }
  0x7c   :  { %v12_v3 = vpop.permute.xlu0 %11  }
  0x7d   :  { %15 = vst.msk [vmem:[#allocation2 + $0x1] sm:$0x1] %vm8_vm0, %v12_v3  }
  0x84   :  { %v19_v4 = vld [vmem:[#allocation2] sm:$0x3] }
  0x85   :  { %21 = vst [vmem:[#allocation0] sm:$0x3] %v19_v4 }
  0x86   :  { %45 = shalt.err (!%p42_p4)
}
  0x87   :  { %s46_s13 = scalar_lea.hbm %s86_s1, 32 }
  0x88   :  { %p47_p5 = scmp.ne.s32.totalorder %s86_s1, %s46_s13  ;;  %p50_p6 = scmp.lt.u32.totalorder %s46_s13, %s86_s1 }
  0x8a   :  { %p52_p7 = pnand %p50_p6, %p47_p5 }
  0x8c   :  { %55 = shalt.err (!%p52_p7)
}
  0x8d   :  { %29 = dma.vmem_to_hbm [thread:$0]  %s27_s9, 32, %s86_s1, [#allocation1]  }
  0x8e   :  { %56 = dma.done.wait [#allocation1], 32  }
  0x8f   :  { %57 = vsyncadd [#allocation1], 4294967264 }
  0x90   :  { %31 = vsyncpa [#allocation1], 1 }

// kernel: overlap_head_forward.1
= control target key start
LH: loop header
LB: loop body
LE: loop exit
PB: predicated region body
PF: predicated region fallthrough
CT: control target
= control target key end

     0   :  { %vm2164_vm0 = vmmov 0   ;;  %vm1393_vm1 = vcmask 261120   ;;  %vm1467_vm2 = vcmask 7168   ;;  %s4014_s1 = inlined_call_operand.vmem [shape: f32[512,512], index: 1, kind: input, shape index: {}]   ;;  %s4015_s0 = inlined_call_operand.vmem [shape: f32[8,512], index: 0, kind: input, shape index: {}]   ;;  %s4016_s3 = inlined_call_operand.vmem [shape: f32[512,512], index: 3, kind: input, shape index: {}]   ;;  %s4017_s2 = inlined_call_operand.vmem [shape: f32[1,512], index: 2, kind: input, shape index: {}]   ;;  %s4018_s5 = inlined_call_operand.vmem [shape: f32[512,32], index: 5, kind: input, shape index: {}]   ;;  %s4019_s4 = inlined_call_operand.vmem [shape: f32[1,512], index: 4, kind: input, shape index: {}]   ;;  %s4020_s7 = inlined_call_operand.vmem [shape: f32[32,1], index: 7, kind: input, shape index: {}]   ;;  %s4021_s8 = inlined_call_operand.<no memory space> [shape: f32[1,1], index: 8, kind: input, shape index: {}]   ;;  %s4022_s6 = inlined_call_operand.vmem [shape: f32[1,32], index: 6, kind: input, shape index: {}]   ;;  %s4023_s9 = inlined_call_operand.vmem [shape: f32[8,1], index: 9, kind: output, shape index: {}]  }
   0x1   :  { %v39_v0 = vld [vmem:[%s4014_s1 + $0x8] sm:$0xff]  ;;  %v41_v2 = vld [vmem:[%s4014_s1 + $0x18] sm:$0xff]  ;;  %v38_v5 = vld [vmem:[%s4014_s1] sm:$0xff] }
   0x2   :  { %v43_v1 = vld [vmem:[%s4014_s1 + $0x28] sm:$0xff]  ;;  %v45_v4 = vld [vmem:[%s4014_s1 + $0x38] sm:$0xff]  ;;  %v42_v6 = vld [vmem:[%s4014_s1 + $0x20] sm:$0xff] }
   0x3   :  { %v1562_v3 = vpack.c.bf16 %v43_v1, %v39_v0  ;;  %v1690_v7 = vpack.c.bf16 %v45_v4, %v41_v2  ;;  %v1564_v8 = vpack.c.bf16 %v42_v6, %v38_v5  ;;  %v40_v9 = vld [vmem:[%s4014_s1 + $0x10] sm:$0xff]  ;;  %v47_v11 = vld [vmem:[%s4014_s1 + $0x48] sm:$0xff]  ;;  %v49_v14 = vld [vmem:[%s4014_s1 + $0x58] sm:$0xff] }
   0x4   :  { %v44_v10 = vld [vmem:[%s4014_s1 + $0x30] sm:$0xff]  ;;  %v51_v13 = vld [vmem:[%s4014_s1 + $0x68] sm:$0xff]  ;;  %v53_v15 = vld [vmem:[%s4014_s1 + $0x78] sm:$0xff] }
   0x5   :  { %1563 = vmatprep.subr.bf16.mxu0 %v1562_v3  ;;  %v1692_v12 = vpack.c.bf16 %v44_v10, %v40_v9  ;;  %1691 = vmatprep.subr.bf16.mxu1 %v1690_v7  ;;  %v1566_v16 = vpack.c.bf16 %v51_v13, %v47_v11  ;;  %v1694_v17 = vpack.c.bf16 %v53_v15, %v49_v14  ;;  %v46_v18 = vld [vmem:[%s4014_s1 + $0x40] sm:$0xff]  ;;  %v48_v20 = vld [vmem:[%s4014_s1 + $0x50] sm:$0xff]  ;;  %v55_v23 = vld [vmem:[%s4014_s1 + $0x88] sm:$0xff] }
   0x6   :  { %1565 = vmatpush1.bf16.msra.mxu0 %v1564_v8  ;;  %v50_v19 = vld [vmem:[%s4014_s1 + $0x60] sm:$0xff]  ;;  %v52_v22 = vld [vmem:[%s4014_s1 + $0x70] sm:$0xff]  ;;  %v59_v24 = vld [vmem:[%s4014_s1 + $0xa8] sm:$0xff] }
   0x7   :  { %1693 = vmatpush1.bf16.msra.mxu1 %v1692_v12  ;;  %v1568_v21 = vpack.c.bf16 %v50_v19, %v46_v18  ;;  %1567 = vmatprep.subr.bf16.mxu0 %v1566_v16  ;;  %v1696_v25 = vpack.c.bf16 %v52_v22, %v48_v20  ;;  %v1570_v26 = vpack.c.bf16 %v59_v24, %v55_v23  ;;  %v57_v27 = vld [vmem:[%s4014_s1 + $0x98] sm:$0xff]  ;;  %v54_v29 = vld [vmem:[%s4014_s1 + $0x80] sm:$0xff]  ;;  %v56_v32 = vld [vmem:[%s4014_s1 + $0x90] sm:$0xff] }
   0x8   :  { %1695 = vmatprep.subr.bf16.mxu1 %v1694_v17  ;;  %v61_v28 = vld [vmem:[%s4014_s1 + $0xb8] sm:$0xff]  ;;  %v58_v31 = vld [vmem:[%s4014_s1 + $0xa0] sm:$0xff]  ;;  %v60_v33 = vld [vmem:[%s4014_s1 + $0xb0] sm:$0xff] }
   0x9   :  { %v1698_v30 = vpack.c.bf16 %v61_v28, %v57_v27  ;;  %v1572_v34 = vpack.c.bf16 %v58_v31, %v54_v29  ;;  %v63_v35 = vld [vmem:[%s4014_s1 + $0xc8] sm:$0xff]  ;;  %v65_v37 = vld [vmem:[%s4014_s1 + $0xd8] sm:$0xff]  ;;  %v1700_v38 = vpack.c.bf16 %v60_v33, %v56_v32  ;;  %v62_v41 = vld [vmem:[%s4014_s1 + $0xc0] sm:$0xff] }
   0xa   :  { %1569 = vmatpush1.bf16.msra.mxu0 %v1568_v21  ;;  %v67_v36 = vld [vmem:[%s4014_s1 + $0xe8] sm:$0xff]  ;;  %v69_v40 = vld [vmem:[%s4014_s1 + $0xf8] sm:$0xff]  ;;  %v66_v42 = vld [vmem:[%s4014_s1 + $0xe0] sm:$0xff] }
   0xb   :  { %1697 = vmatpush1.bf16.msra.mxu1 %v1696_v25  ;;  %1571 = vmatprep.subr.bf16.mxu0 %v1570_v26  ;;  %v1574_v39 = vpack.c.bf16 %v67_v36, %v63_v35  ;;  %v1702_v43 = vpack.c.bf16 %v69_v40, %v65_v37  ;;  %v64_v44 = vld [vmem:[%s4014_s1 + $0xd0] sm:$0xff]  ;;  %v71_v46 = vld [vmem:[%s4014_s1 + $0x108] sm:$0xff]  ;;  %v73_v48 = vld [vmem:[%s4014_s1 + $0x118] sm:$0xff]  ;;  %v1576_v50 = vpack.c.bf16 %v66_v42, %v62_v41 }
   0xc   :  { %1699 = vmatprep.subr.bf16.mxu1 %v1698_v30  ;;  %v68_v45 = vld [vmem:[%s4014_s1 + $0xf0] sm:$0xff]  ;;  %v75_v47 = vld [vmem:[%s4014_s1 + $0x128] sm:$0xff]  ;;  %v77_v49 = vld [vmem:[%s4014_s1 + $0x138] sm:$0xff] }
   0xd   :  { %v1704_v51 = vpack.c.bf16 %v68_v45, %v64_v44  ;;  %v1578_v52 = vpack.c.bf16 %v75_v47, %v71_v46  ;;  %v70_v53 = vld [vmem:[%s4014_s1 + $0x100] sm:$0xff]  ;;  %v72_v55 = vld [vmem:[%s4014_s1 + $0x110] sm:$0xff]  ;;  %v1706_v56 = vpack.c.bf16 %v77_v49, %v73_v48  ;;  %v79_v58 = vld [vmem:[%s4014_s1 + $0x148] sm:$0xff] }
   0xe   :  { %1573 = vmatpush1.bf16.msra.mxu0 %v1572_v34  ;;  %v74_v54 = vld [vmem:[%s4014_s1 + $0x120] sm:$0xff]  ;;  %v76_v57 = vld [vmem:[%s4014_s1 + $0x130] sm:$0xff]  ;;  %v83_v59 = vld [vmem:[%s4014_s1 + $0x168] sm:$0xff] }
   0xf   :  { %1701 = vmatpush1.bf16.msra.mxu1 %v1700_v38  ;;  %1575 = vmatprep.subr.bf16.mxu0 %v1574_v39  ;;  %v81_v60 = vld [vmem:[%s4014_s1 + $0x158] sm:$0xff]  ;;  %v1580_v62 = vpack.c.bf16 %v74_v54, %v70_v53  ;;  %v1708_v63 = vpack.c.bf16 %v76_v57, %v72_v55  ;;  %v1582_v0 = vpack.c.bf16 %v83_v59, %v79_v58  ;;  %v78_v1 = vld [vmem:[%s4014_s1 + $0x140] sm:$0xff]  ;;  %v80_v3 = vld [vmem:[%s4014_s1 + $0x150] sm:$0xff] }
  0x10   :  { %1703 = vmatprep.subr.bf16.mxu1 %v1702_v43  ;;  %v85_v61 = vld [vmem:[%s4014_s1 + $0x178] sm:$0xff]  ;;  %v82_v2 = vld [vmem:[%s4014_s1 + $0x160] sm:$0xff]  ;;  %v84_v5 = vld [vmem:[%s4014_s1 + $0x170] sm:$0xff] }
  0x11   :  { %v1710_v4 = vpack.c.bf16 %v85_v61, %v81_v60  ;;  %v87_v6 = vld [vmem:[%s4014_s1 + $0x188] sm:$0xff]  ;;  %v89_v8 = vld [vmem:[%s4014_s1 + $0x198] sm:$0xff]  ;;  %v1584_v10 = vpack.c.bf16 %v82_v2, %v78_v1  ;;  %v1712_v11 = vpack.c.bf16 %v84_v5, %v80_v3  ;;  %v86_v13 = vld [vmem:[%s4014_s1 + $0x180] sm:$0xff] }
  0x12   :  { %1577 = vmatpush1.bf16.msra.mxu0 %v1576_v50  ;;  %v91_v7 = vld [vmem:[%s4014_s1 + $0x1a8] sm:$0xff]  ;;  %v93_v9 = vld [vmem:[%s4014_s1 + $0x1b8] sm:$0xff]  ;;  %v90_v14 = vld [vmem:[%s4014_s1 + $0x1a0] sm:$0xff] }
  0x13   :  { %1705 = vmatpush1.bf16.msra.mxu1 %v1704_v51  ;;  %1579 = vmatprep.subr.bf16.mxu0 %v1578_v52  ;;  %v1586_v12 = vpack.c.bf16 %v91_v7, %v87_v6  ;;  %v88_v15 = vld [vmem:[%s4014_s1 + $0x190] sm:$0xff]  ;;  %v1714_v16 = vpack.c.bf16 %v93_v9, %v89_v8  ;;  %v95_v18 = vld [vmem:[%s4014_s1 + $0x1c8] sm:$0xff]  ;;  %v97_v20 = vld [vmem:[%s4014_s1 + $0x1d8] sm:$0xff]  ;;  %v1588_v22 = vpack.c.bf16 %v90_v14, %v86_v13 }
  0x14   :  { %1707 = vmatprep.subr.bf16.mxu1 %v1706_v56  ;;  %v92_v17 = vld [vmem:[%s4014_s1 + $0x1b0] sm:$0xff]  ;;  %v99_v19 = vld [vmem:[%s4014_s1 + $0x1e8] sm:$0xff]  ;;  %v101_v21 = vld [vmem:[%s4014_s1 + $0x1f8] sm:$0xff] }
  0x15   :  { %v1716_v23 = vpack.c.bf16 %v92_v17, %v88_v15  ;;  %v1590_v24 = vpack.c.bf16 %v99_v19, %v95_v18  ;;  %v94_v25 = vld [vmem:[%s4014_s1 + $0x1c0] sm:$0xff]  ;;  %v96_v27 = vld [vmem:[%s4014_s1 + $0x1d0] sm:$0xff]  ;;  %v1718_v28 = vpack.c.bf16 %v101_v21, %v97_v20  ;;  %v103_v30 = vld [vmem:[%s4014_s1 + $0x208] sm:$0xff] }
  0x16   :  { %1581 = vmatpush1.bf16.msra.mxu0 %v1580_v62  ;;  %v98_v26 = vld [vmem:[%s4014_s1 + $0x1e0] sm:$0xff]  ;;  %v100_v29 = vld [vmem:[%s4014_s1 + $0x1f0] sm:$0xff]  ;;  %v107_v31 = vld [vmem:[%s4014_s1 + $0x228] sm:$0xff] }
  0x17   :  { %1709 = vmatpush1.bf16.msra.mxu1 %v1708_v63  ;;  %1583 = vmatprep.subr.bf16.mxu0 %v1582_v0  ;;  %v105_v32 = vld [vmem:[%s4014_s1 + $0x218] sm:$0xff]  ;;  %v1592_v34 = vpack.c.bf16 %v98_v26, %v94_v25  ;;  %v1720_v35 = vpack.c.bf16 %v100_v29, %v96_v27  ;;  %v1594_v36 = vpack.c.bf16 %v107_v31, %v103_v30  ;;  %v102_v37 = vld [vmem:[%s4014_s1 + $0x200] sm:$0xff]  ;;  %v104_v39 = vld [vmem:[%s4014_s1 + $0x210] sm:$0xff] }
  0x18   :  { %1711 = vmatprep.subr.bf16.mxu1 %v1710_v4  ;;  %v109_v33 = vld [vmem:[%s4014_s1 + $0x238] sm:$0xff]  ;;  %v106_v38 = vld [vmem:[%s4014_s1 + $0x220] sm:$0xff]  ;;  %v108_v41 = vld [vmem:[%s4014_s1 + $0x230] sm:$0xff] }
  0x19   :  { %v1722_v40 = vpack.c.bf16 %v109_v33, %v105_v32  ;;  %v111_v42 = vld [vmem:[%s4014_s1 + $0x248] sm:$0xff]  ;;  %v113_v44 = vld [vmem:[%s4014_s1 + $0x258] sm:$0xff]  ;;  %v1596_v46 = vpack.c.bf16 %v106_v38, %v102_v37  ;;  %v1724_v47 = vpack.c.bf16 %v108_v41, %v104_v39  ;;  %v110_v49 = vld [vmem:[%s4014_s1 + $0x240] sm:$0xff] }
  0x1a   :  { %1585 = vmatpush1.bf16.msra.mxu0 %v1584_v10  ;;  %v115_v43 = vld [vmem:[%s4014_s1 + $0x268] sm:$0xff]  ;;  %v117_v45 = vld [vmem:[%s4014_s1 + $0x278] sm:$0xff]  ;;  %v114_v50 = vld [vmem:[%s4014_s1 + $0x260] sm:$0xff] }
  0x1b   :  { %1713 = vmatpush1.bf16.msra.mxu1 %v1712_v11  ;;  %1587 = vmatprep.subr.bf16.mxu0 %v1586_v12  ;;  %v1598_v48 = vpack.c.bf16 %v115_v43, %v111_v42  ;;  %v112_v51 = vld [vmem:[%s4014_s1 + $0x250] sm:$0xff]  ;;  %v1726_v52 = vpack.c.bf16 %v117_v45, %v113_v44  ;;  %v119_v54 = vld [vmem:[%s4014_s1 + $0x288] sm:$0xff]  ;;  %v121_v56 = vld [vmem:[%s4014_s1 + $0x298] sm:$0xff]  ;;  %v1600_v58 = vpack.c.bf16 %v114_v50, %v110_v49 }
  0x1c   :  { %1715 = vmatprep.subr.bf16.mxu1 %v1714_v16  ;;  %v116_v53 = vld [vmem:[%s4014_s1 + $0x270] sm:$0xff]  ;;  %v123_v55 = vld [vmem:[%s4014_s1 + $0x2a8] sm:$0xff]  ;;  %v125_v57 = vld [vmem:[%s4014_s1 + $0x2b8] sm:$0xff] }
  0x1d   :  { %v1728_v59 = vpack.c.bf16 %v116_v53, %v112_v51  ;;  %v1602_v60 = vpack.c.bf16 %v123_v55, %v119_v54  ;;  %v118_v61 = vld [vmem:[%s4014_s1 + $0x280] sm:$0xff]  ;;  %v120_v63 = vld [vmem:[%s4014_s1 + $0x290] sm:$0xff]  ;;  %v1730_v0 = vpack.c.bf16 %v125_v57, %v121_v56  ;;  %v127_v2 = vld [vmem:[%s4014_s1 + $0x2c8] sm:$0xff] }
  0x1e   :  { %1589 = vmatpush1.bf16.msra.mxu0 %v1588_v22  ;;  %v122_v62 = vld [vmem:[%s4014_s1 + $0x2a0] sm:$0xff]  ;;  %v124_v1 = vld [vmem:[%s4014_s1 + $0x2b0] sm:$0xff]  ;;  %v131_v3 = vld [vmem:[%s4014_s1 + $0x2e8] sm:$0xff] }
  0x1f   :  { %1717 = vmatpush1.bf16.msra.mxu1 %v1716_v23  ;;  %1591 = vmatprep.subr.bf16.mxu0 %v1590_v24  ;;  %v129_v4 = vld [vmem:[%s4014_s1 + $0x2d8] sm:$0xff]  ;;  %v1604_v6 = vpack.c.bf16 %v122_v62, %v118_v61  ;;  %v126_v7 = vld [vmem:[%s4014_s1 + $0x2c0] sm:$0xff]  ;;  %v1732_v8 = vpack.c.bf16 %v124_v1, %v120_v63  ;;  %v1606_v9 = vpack.c.bf16 %v131_v3, %v127_v2  ;;  %v128_v11 = vld [vmem:[%s4014_s1 + $0x2d0] sm:$0xff] }
  0x20   :  { %1719 = vmatprep.subr.bf16.mxu1 %v1718_v28  ;;  %v133_v5 = vld [vmem:[%s4014_s1 + $0x2f8] sm:$0xff]  ;;  %v130_v10 = vld [vmem:[%s4014_s1 + $0x2e0] sm:$0xff]  ;;  %v132_v12 = vld [vmem:[%s4014_s1 + $0x2f0] sm:$0xff] }
  0x21   :  { %v1734_v13 = vpack.c.bf16 %v133_v5, %v129_v4  ;;  %v135_v14 = vld [vmem:[%s4014_s1 + $0x308] sm:$0xff]  ;;  %v137_v17 = vld [vmem:[%s4014_s1 + $0x318] sm:$0xff]  ;;  %v1608_v19 = vpack.c.bf16 %v130_v10, %v126_v7  ;;  %v1736_v20 = vpack.c.bf16 %v132_v12, %v128_v11  ;;  %v134_v22 = vld [vmem:[%s4014_s1 + $0x300] sm:$0xff] }
  0x22   :  { %1593 = vmatpush1.bf16.msra.mxu0 %v1592_v34  ;;  %v139_v15 = vld [vmem:[%s4014_s1 + $0x328] sm:$0xff]  ;;  %v141_v18 = vld [vmem:[%s4014_s1 + $0x338] sm:$0xff]  ;;  %v138_v23 = vld [vmem:[%s4014_s1 + $0x320] sm:$0xff] }
  0x23   :  { %1721 = vmatpush1.bf16.msra.mxu1 %v1720_v35  ;;  %1595 = vmatprep.subr.bf16.mxu0 %v1594_v36  ;;  %v35_v16 = vld [vmem:[%s4015_s0 + $0x8] sm:$0xff]  ;;  %v1610_v21 = vpack.c.bf16 %v139_v15, %v135_v14  ;;  %v136_v24 = vld [vmem:[%s4014_s1 + $0x310] sm:$0xff]  ;;  %v1738_v25 = vpack.c.bf16 %v141_v18, %v137_v17  ;;  %v145_v29 = vld [vmem:[%s4014_s1 + $0x358] sm:$0xff]  ;;  %v1612_v31 = vpack.c.bf16 %v138_v23, %v134_v22 }
  0x24   :  { %1723 = vmatprep.subr.bf16.mxu1 %v1722_v40  ;;  %380 = vmatprep.mubr.f32.mxu0 %v35_v16  ;;  %v140_v26 = vld [vmem:[%s4014_s1 + $0x330] sm:$0xff]  ;;  %v143_v27 = vld [vmem:[%s4014_s1 + $0x348] sm:$0xff]  ;;  %v149_v30 = vld [vmem:[%s4014_s1 + $0x378] sm:$0xff] }
  0x25   :  { %522 = vmatprep.mubr.f32.mxu1 %v35_v16  ;;  %v147_v28 = vld [vmem:[%s4014_s1 + $0x368] sm:$0xff]  ;;  %v1740_v32 = vpack.c.bf16 %v140_v26, %v136_v24  ;;  %v142_v34 = vld [vmem:[%s4014_s1 + $0x340] sm:$0xff]  ;;  %v144_v36 = vld [vmem:[%s4014_s1 + $0x350] sm:$0xff]  ;;  %v1742_v37 = vpack.c.bf16 %v149_v30, %v145_v29 }
  0x26   :  { %1597 = vmatpush1.bf16.msra.mxu0 %v1596_v46  ;;  %v1614_v33 = vpack.c.bf16 %v147_v28, %v143_v27  ;;  %v146_v35 = vld [vmem:[%s4014_s1 + $0x360] sm:$0xff]  ;;  %v148_v38 = vld [vmem:[%s4014_s1 + $0x370] sm:$0xff]  ;;  %v151_v39 = vld [vmem:[%s4014_s1 + $0x388] sm:$0xff] }
  0x27   :  { %1725 = vmatpush1.bf16.msra.mxu1 %v1724_v47  ;;  %1599 = vmatprep.subr.bf16.mxu0 %v1598_v48  ;;  %v155_v40 = vld [vmem:[%s4014_s1 + $0x3a8] sm:$0xff]  ;;  %v153_v41 = vld [vmem:[%s4014_s1 + $0x398] sm:$0xff]  ;;  %v1616_v43 = vpack.c.bf16 %v146_v35, %v142_v34  ;;  %v1744_v44 = vpack.c.bf16 %v148_v38, %v144_v36  ;;  %v150_v46 = vld [vmem:[%s4014_s1 + $0x380] sm:$0xff] }
  0x28   :  { %1727 = vmatprep.subr.bf16.mxu1 %v1726_v52  ;;  %v157_v42 = vld [vmem:[%s4014_s1 + $0x3b8] sm:$0xff]  ;;  %v1618_v45 = vpack.c.bf16 %v155_v40, %v151_v39  ;;  %v154_v47 = vld [vmem:[%s4014_s1 + $0x3a0] sm:$0xff]  ;;  %v152_v48 = vld [vmem:[%s4014_s1 + $0x390] sm:$0xff] }
  0x29   :  { %v1746_v49 = vpack.c.bf16 %v157_v42, %v153_v41  ;;  %v156_v50 = vld [vmem:[%s4014_s1 + $0x3b0] sm:$0xff]  ;;  %v159_v51 = vld [vmem:[%s4014_s1 + $0x3c8] sm:$0xff]  ;;  %v161_v53 = vld [vmem:[%s4014_s1 + $0x3d8] sm:$0xff]  ;;  %v1620_v55 = vpack.c.bf16 %v154_v47, %v150_v46 }
  0x2a   :  { %1601 = vmatpush1.bf16.msra.mxu0 %v1600_v58  ;;  %v163_v52 = vld [vmem:[%s4014_s1 + $0x3e8] sm:$0xff]  ;;  %v165_v54 = vld [vmem:[%s4014_s1 + $0x3f8] sm:$0xff]  ;;  %v1748_v56 = vpack.c.bf16 %v156_v50, %v152_v48  ;;  %v158_v58 = vld [vmem:[%s4014_s1 + $0x3c0] sm:$0xff] }
  0x2b   :  { %1729 = vmatpush1.bf16.msra.mxu1 %v1728_v59  ;;  %1603 = vmatprep.subr.bf16.mxu0 %v1602_v60  ;;  %v1622_v57 = vpack.c.bf16 %v163_v52, %v159_v51  ;;  %v162_v59 = vld [vmem:[%s4014_s1 + $0x3e0] sm:$0xff]  ;;  %v160_v60 = vld [vmem:[%s4014_s1 + $0x3d0] sm:$0xff]  ;;  %v1750_v61 = vpack.c.bf16 %v165_v54, %v161_v53  ;;  %v167_v63 = vld [vmem:[%s4014_s1 + $0x408] sm:$0xff] }
  0x2c   :  { %1731 = vmatprep.subr.bf16.mxu1 %v1730_v0  ;;  %v164_v62 = vld [vmem:[%s4014_s1 + $0x3f0] sm:$0xff]  ;;  %v171_v0 = vld [vmem:[%s4014_s1 + $0x428] sm:$0xff]  ;;  %v169_v1 = vld [vmem:[%s4014_s1 + $0x418] sm:$0xff]  ;;  %v1624_v3 = vpack.c.bf16 %v162_v59, %v158_v58 }
  0x2d   :  { %v173_v2 = vld [vmem:[%s4014_s1 + $0x438] sm:$0xff]  ;;  %v1752_v4 = vpack.c.bf16 %v164_v62, %v160_v60  ;;  %v1626_v5 = vpack.c.bf16 %v171_v0, %v167_v63  ;;  %v170_v7 = vld [vmem:[%s4014_s1 + $0x420] sm:$0xff]  ;;  %v172_v10 = vld [vmem:[%s4014_s1 + $0x430] sm:$0xff] }
  0x2e   :  { %1605 = vmatpush1.bf16.msra.mxu0 %v1604_v6  ;;  %v166_v6 = vld [vmem:[%s4014_s1 + $0x400] sm:$0xff]  ;;  %v175_v11 = vld [vmem:[%s4014_s1 + $0x448] sm:$0xff]  ;;  %v181_v14 = vld [vmem:[%s4014_s1 + $0x478] sm:$0xff] }
  0x2f   :  { %1733 = vmatpush1.bf16.msra.mxu1 %v1732_v8  ;;  %1607 = vmatprep.subr.bf16.mxu0 %v1606_v9  ;;  %v168_v8 = vld [vmem:[%s4014_s1 + $0x410] sm:$0xff]  ;;  %v1754_v9 = vpack.c.bf16 %v173_v2, %v169_v1  ;;  %v179_v12 = vld [vmem:[%s4014_s1 + $0x468] sm:$0xff]  ;;  %v34_v15 = vld [vmem:[%s4015_s0] sm:$0xff]  ;;  %v1628_v16 = vpack.c.bf16 %v170_v7, %v166_v6 }
  0x30   :  { %1735 = vmatprep.subr.bf16.mxu1 %v1734_v13  ;;  %v177_v13 = vld [vmem:[%s4014_s1 + $0x458] sm:$0xff]  ;;  %v1756_v17 = vpack.c.bf16 %v172_v10, %v168_v8  ;;  %v1630_v18 = vpack.c.bf16 %v179_v12, %v175_v11  ;;  %v180_v23 = vld [vmem:[%s4014_s1 + $0x470] sm:$0xff]  ;;  %v183_v24 = vld [vmem:[%s4014_s1 + $0x488] sm:$0xff] }
  0x31   :  { %v1758_v22 = vpack.c.bf16 %v181_v14, %v177_v13  ;;  %v185_v26 = vld [vmem:[%s4014_s1 + $0x498] sm:$0xff]  ;;  %v188_v35 = vld [vmem:[%s4014_s1 + $0x4b0] sm:$0xff]  ;;  %v191_v36 = vld [vmem:[%s4014_s1 + $0x4c8] sm:$0xff] }
  0x32   :  { %1609 = vmatpush1.bf16.msra.mxu0 %v1608_v19  ;;  %v174_v19 = vld [vmem:[%s4014_s1 + $0x440] sm:$0xff]  ;;  %v189_v27 = vld [vmem:[%s4014_s1 + $0x4b8] sm:$0xff]  ;;  %v196_v47 = vld [vmem:[%s4014_s1 + $0x4f0] sm:$0xff] }
  0x33   :  { %1737 = vmatpush1.bf16.msra.mxu1 %v1736_v20  ;;  %1611 = vmatprep.subr.bf16.mxu0 %v1610_v21  ;;  %v178_v20 = vld [vmem:[%s4014_s1 + $0x460] sm:$0xff]  ;;  %v176_v21 = vld [vmem:[%s4014_s1 + $0x450] sm:$0xff]  ;;  %v1762_v34 = vpack.c.bf16 %v189_v27, %v185_v26  ;;  %v193_v38 = vld [vmem:[%s4014_s1 + $0x4d8] sm:$0xff] }
  0x34   :  { %1739 = vmatprep.subr.bf16.mxu1 %v1738_v25  ;;  %v187_v25 = vld [vmem:[%s4014_s1 + $0x4a8] sm:$0xff]  ;;  %v1632_v28 = vpack.c.bf16 %v178_v20, %v174_v19  ;;  %v1760_v29 = vpack.c.bf16 %v180_v23, %v176_v21  ;;  %v197_v39 = vld [vmem:[%s4014_s1 + $0x4f8] sm:$0xff]  ;;  %v204_v59 = vld [vmem:[%s4014_s1 + $0x530] sm:$0xff] }
  0x35   :  { %v1634_v30 = vpack.c.bf16 %v187_v25, %v183_v24  ;;  %v1766_v46 = vpack.c.bf16 %v197_v39, %v193_v38  ;;  %v199_v48 = vld [vmem:[%s4014_s1 + $0x508] sm:$0xff]  ;;  %v201_v50 = vld [vmem:[%s4014_s1 + $0x518] sm:$0xff]  ;;  %v212_v7 = vld [vmem:[%s4014_s1 + $0x570] sm:$0xff] }
  0x36   :  { %1613 = vmatpush1.bf16.msra.mxu0 %v1612_v31  ;;  %v182_v31 = vld [vmem:[%s4014_s1 + $0x480] sm:$0xff]  ;;  %v205_v51 = vld [vmem:[%s4014_s1 + $0x538] sm:$0xff]  ;;  %v207_v60 = vld [vmem:[%s4014_s1 + $0x548] sm:$0xff] }
  0x37   :  { %1741 = vmatpush1.bf16.msra.mxu1 %v1740_v32  ;;  %1615 = vmatprep.subr.bf16.mxu0 %v1614_v33  ;;  %v186_v32 = vld [vmem:[%s4014_s1 + $0x4a0] sm:$0xff]  ;;  %v184_v33 = vld [vmem:[%s4014_s1 + $0x490] sm:$0xff]  ;;  %v1770_v58 = vpack.c.bf16 %v205_v51, %v201_v50  ;;  %v209_v62 = vld [vmem:[%s4014_s1 + $0x558] sm:$0xff] }
  0x38   :  { %1743 = vmatprep.subr.bf16.mxu1 %v1742_v37  ;;  %v195_v37 = vld [vmem:[%s4014_s1 + $0x4e8] sm:$0xff]  ;;  %v1636_v40 = vpack.c.bf16 %v186_v32, %v182_v31  ;;  %v1764_v41 = vpack.c.bf16 %v188_v35, %v184_v33  ;;  %v213_v63 = vld [vmem:[%s4014_s1 + $0x578] sm:$0xff]  ;;  %v214_v13 = vld [vmem:[%s4014_s1 + $0x580] sm:$0xff] }
  0x39   :  { %v1638_v42 = vpack.c.bf16 %v195_v37, %v191_v36  ;;  %v1774_v6 = vpack.c.bf16 %v213_v63, %v209_v62  ;;  %v215_v8 = vld [vmem:[%s4014_s1 + $0x588] sm:$0xff]  ;;  %v217_v10 = vld [vmem:[%s4014_s1 + $0x598] sm:$0xff]  ;;  %v228_v32 = vld [vmem:[%s4014_s1 + $0x5f0] sm:$0xff] }
  0x3a   :  { %1617 = vmatpush1.bf16.msra.mxu0 %v1616_v43  ;;  %v190_v43 = vld [vmem:[%s4014_s1 + $0x4c0] sm:$0xff]  ;;  %v221_v11 = vld [vmem:[%s4014_s1 + $0x5b8] sm:$0xff]  ;;  %v223_v20 = vld [vmem:[%s4014_s1 + $0x5c8] sm:$0xff] }
  0x3b   :  { %1745 = vmatpush1.bf16.msra.mxu1 %v1744_v44  ;;  %1619 = vmatprep.subr.bf16.mxu0 %v1618_v45  ;;  %v194_v44 = vld [vmem:[%s4014_s1 + $0x4e0] sm:$0xff]  ;;  %v192_v45 = vld [vmem:[%s4014_s1 + $0x4d0] sm:$0xff]  ;;  %v1778_v19 = vpack.c.bf16 %v221_v11, %v217_v10  ;;  %v227_v21 = vld [vmem:[%s4014_s1 + $0x5e8] sm:$0xff] }
  0x3c   :  { %1747 = vmatprep.subr.bf16.mxu1 %v1746_v49  ;;  %v203_v49 = vld [vmem:[%s4014_s1 + $0x528] sm:$0xff]  ;;  %v1640_v52 = vpack.c.bf16 %v194_v44, %v190_v43  ;;  %v1768_v53 = vpack.c.bf16 %v196_v47, %v192_v45  ;;  %v225_v23 = vld [vmem:[%s4014_s1 + $0x5d8] sm:$0xff]  ;;  %v1654_v27 = vpack.c.bf16 %v227_v21, %v223_v20  ;;  %v236_v44 = vld [vmem:[%s4014_s1 + $0x630] sm:$0xff] }
  0x3d   :  { %v1642_v54 = vpack.c.bf16 %v203_v49, %v199_v48  ;;  %v229_v24 = vld [vmem:[%s4014_s1 + $0x5f8] sm:$0xff]  ;;  %v231_v33 = vld [vmem:[%s4014_s1 + $0x608] sm:$0xff] }
  0x3e   :  { %1621 = vmatpush1.bf16.msra.mxu0 %v1620_v55  ;;  %v198_v55 = vld [vmem:[%s4014_s1 + $0x500] sm:$0xff]  ;;  %v1782_v31 = vpack.c.bf16 %v229_v24, %v225_v23  ;;  %v233_v35 = vld [vmem:[%s4014_s1 + $0x618] sm:$0xff]  ;;  %v239_v45 = vld [vmem:[%s4014_s1 + $0x648] sm:$0xff] }
  0x3f   :  { %1749 = vmatpush1.bf16.msra.mxu1 %v1748_v56  ;;  %1623 = vmatprep.subr.bf16.mxu0 %v1622_v57  ;;  %v202_v56 = vld [vmem:[%s4014_s1 + $0x520] sm:$0xff]  ;;  %v200_v57 = vld [vmem:[%s4014_s1 + $0x510] sm:$0xff]  ;;  %v237_v36 = vld [vmem:[%s4014_s1 + $0x638] sm:$0xff] }
  0x40   :  { %1751 = vmatprep.subr.bf16.mxu1 %v1750_v61  ;;  %v211_v61 = vld [vmem:[%s4014_s1 + $0x568] sm:$0xff]  ;;  %v1644_v0 = vpack.c.bf16 %v202_v56, %v198_v55  ;;  %v1772_v1 = vpack.c.bf16 %v204_v59, %v200_v57  ;;  %v1786_v43 = vpack.c.bf16 %v237_v36, %v233_v35  ;;  %v241_v47 = vld [vmem:[%s4014_s1 + $0x658] sm:$0xff]  ;;  %v244_v56 = vld [vmem:[%s4014_s1 + $0x670] sm:$0xff] }
  0x41   :  { %v1646_v2 = vpack.c.bf16 %v211_v61, %v207_v60  ;;  %v245_v48 = vld [vmem:[%s4014_s1 + $0x678] sm:$0xff]  ;;  %v247_v57 = vld [vmem:[%s4014_s1 + $0x688] sm:$0xff]  ;;  %v262_v24 = vld [vmem:[%s4014_s1 + $0x700] sm:$0xff] }
  0x42   :  { %1625 = vmatpush1.bf16.msra.mxu0 %v1624_v3  ;;  %v206_v3 = vld [vmem:[%s4014_s1 + $0x540] sm:$0xff]  ;;  %v1790_v55 = vpack.c.bf16 %v245_v48, %v241_v47  ;;  %v249_v59 = vld [vmem:[%s4014_s1 + $0x698] sm:$0xff] }
  0x43   :  { %1753 = vmatpush1.bf16.msra.mxu1 %v1752_v4  ;;  %1627 = vmatprep.subr.bf16.mxu0 %v1626_v5  ;;  %v210_v4 = vld [vmem:[%s4014_s1 + $0x560] sm:$0xff]  ;;  %v208_v5 = vld [vmem:[%s4014_s1 + $0x550] sm:$0xff]  ;;  %v253_v60 = vld [vmem:[%s4014_s1 + $0x6b8] sm:$0xff] }
  0x44   :  { %1755 = vmatprep.subr.bf16.mxu1 %v1754_v9  ;;  %v219_v9 = vld [vmem:[%s4014_s1 + $0x5a8] sm:$0xff]  ;;  %v1648_v12 = vpack.c.bf16 %v210_v4, %v206_v3  ;;  %v1776_v14 = vpack.c.bf16 %v212_v7, %v208_v5  ;;  %v1794_v3 = vpack.c.bf16 %v253_v60, %v249_v59  ;;  %v252_v4 = vld [vmem:[%s4014_s1 + $0x6b0] sm:$0xff]  ;;  %v257_v7 = vld [vmem:[%s4014_s1 + $0x6d8] sm:$0xff] }
  0x45   :  { %381 = vmatmul.mubr.f32.vlgmr.msra.gmra.mrb[0].mxu0 %v34_v15  ;;  %v255_v5 = vld [vmem:[%s4014_s1 + $0x6c8] sm:$0xff]  ;;  %v269_v20 = vld [vmem:[%s4014_s1 + $0x738] sm:$0xff]  ;;  %v270_v36 = vld [vmem:[%s4014_s1 + $0x740] sm:$0xff] }
  0x46   :  { %1629 = vmatpush1.bf16.msra.mxu0 %v1628_v16  ;;  %523 = vmatmul.mubr.f32.vlgmr.msra.gmra.mrb[0].mxu1 %v34_v15  ;;  %v1650_v15 = vpack.c.bf16 %v219_v9, %v215_v8  ;;  %v218_v16 = vld [vmem:[%s4014_s1 + $0x5a0] sm:$0xff]  ;;  %v261_v8 = vld [vmem:[%s4014_s1 + $0x6f8] sm:$0xff] }
  0x47   :  { %1757 = vmatpush1.bf16.msra.mxu1 %v1756_v17  ;;  %1631 = vmatprep.subr.bf16.mxu0 %v1630_v18  ;;  %v216_v17 = vld [vmem:[%s4014_s1 + $0x590] sm:$0xff]  ;;  %v1652_v25 = vpack.c.bf16 %v218_v16, %v214_v13  ;;  %v258_v13 = vld [vmem:[%s4014_s1 + $0x6e0] sm:$0xff] }
  0x48   :  { %1759 = vmatprep.subr.bf16.mxu1 %v1758_v22  ;;  %v220_v18 = vld [vmem:[%s4014_s1 + $0x5b0] sm:$0xff]  ;;  %v37_v22 = vld [vmem:[%s4015_s0 + $0x18] sm:$0xff]  ;;  %v278_v48 = vld [vmem:[%s4014_s1 + $0x780] sm:$0xff] }
  0x49   :  { %451 = vmatprep.mubr.f32.mxu0 %v37_v22  ;;  %593 = vmatprep.mubr.f32.mxu1 %v37_v22  ;;  %v1780_v26 = vpack.c.bf16 %v220_v18, %v216_v17  ;;  %v260_v16 = vld [vmem:[%s4014_s1 + $0x6f0] sm:$0xff]  ;;  %v263_v17 = vld [vmem:[%s4014_s1 + $0x708] sm:$0xff]  ;;  %v286_v60 = vld [vmem:[%s4014_s1 + $0x7c0] sm:$0xff] }
  0x4a   :  { %1633 = vmatpush1.bf16.msra.mxu0 %v1632_v28  ;;  %v222_v28 = vld [vmem:[%s4014_s1 + $0x5c0] sm:$0xff]  ;;  %v267_v18 = vld [vmem:[%s4014_s1 + $0x728] sm:$0xff] }
  0x4b   :  { %1761 = vmatpush1.bf16.msra.mxu1 %v1760_v29  ;;  %1635 = vmatprep.subr.bf16.mxu0 %v1634_v30  ;;  %v226_v29 = vld [vmem:[%s4014_s1 + $0x5e0] sm:$0xff]  ;;  %v224_v30 = vld [vmem:[%s4014_s1 + $0x5d0] sm:$0xff]  ;;  %v1674_v23 = vpack.c.bf16 %v267_v18, %v263_v17 }
  0x4c   :  { %1763 = vmatprep.subr.bf16.mxu1 %v1762_v34  ;;  %v235_v34 = vld [vmem:[%s4014_s1 + $0x628] sm:$0xff]  ;;  %v1656_v37 = vpack.c.bf16 %v226_v29, %v222_v28  ;;  %v1784_v38 = vpack.c.bf16 %v228_v32, %v224_v30  ;;  %v268_v28 = vld [vmem:[%s4014_s1 + $0x730] sm:$0xff]  ;;  %v277_v32 = vld [vmem:[%s4014_s1 + $0x778] sm:$0xff] }
  0x4d   :  { %v1658_v39 = vpack.c.bf16 %v235_v34, %v231_v33  ;;  %v271_v29 = vld [vmem:[%s4014_s1 + $0x748] sm:$0xff]  ;;  %v36_v17 = vld [vmem:[%s4015_s0 + $0x10] sm:$0xff] }
  0x4e   :  { %1637 = vmatpush1.bf16.msra.mxu0 %v1636_v40  ;;  %v230_v40 = vld [vmem:[%s4014_s1 + $0x600] sm:$0xff]  ;;  %v275_v30 = vld [vmem:[%s4014_s1 + $0x768] sm:$0xff] }
  0x4f   :  { %1765 = vmatpush1.bf16.msra.mxu1 %v1764_v41  ;;  %1639 = vmatprep.subr.bf16.mxu0 %v1638_v42  ;;  %v234_v41 = vld [vmem:[%s4014_s1 + $0x620] sm:$0xff]  ;;  %v232_v42 = vld [vmem:[%s4014_s1 + $0x610] sm:$0xff]  ;;  %v1678_v35 = vpack.c.bf16 %v275_v30, %v271_v29  ;;  %v627_v29 = vld [vmem:[%s4016_s3 + $0xb8] sm:$0xff] }
  0x50   :  { %1767 = vmatprep.subr.bf16.mxu1 %v1766_v46  ;;  %v243_v46 = vld [vmem:[%s4014_s1 + $0x668] sm:$0xff]  ;;  %v1660_v49 = vpack.c.bf16 %v234_v41, %v230_v40  ;;  %v1788_v50 = vpack.c.bf16 %v236_v44, %v232_v42  ;;  %v276_v40 = vld [vmem:[%s4014_s1 + $0x770] sm:$0xff]  ;;  %v285_v44 = vld [vmem:[%s4014_s1 + $0x7b8] sm:$0xff] }
  0x51   :  { %v1662_v51 = vpack.c.bf16 %v243_v46, %v239_v45  ;;  %v279_v41 = vld [vmem:[%s4014_s1 + $0x788] sm:$0xff] }
  0x52   :  { %1641 = vmatpush1.bf16.msra.mxu0 %v1640_v52  ;;  %v238_v52 = vld [vmem:[%s4014_s1 + $0x640] sm:$0xff]  ;;  %v283_v42 = vld [vmem:[%s4014_s1 + $0x7a8] sm:$0xff] }
  0x53   :  { %1769 = vmatpush1.bf16.msra.mxu1 %v1768_v53  ;;  %1643 = vmatprep.subr.bf16.mxu0 %v1642_v54  ;;  %v242_v53 = vld [vmem:[%s4014_s1 + $0x660] sm:$0xff]  ;;  %v240_v54 = vld [vmem:[%s4014_s1 + $0x650] sm:$0xff]  ;;  %v1682_v47 = vpack.c.bf16 %v283_v42, %v279_v41  ;;  %v635_v41 = vld [vmem:[%s4016_s3 + $0xf8] sm:$0xff] }
  0x54   :  { %1771 = vmatprep.subr.bf16.mxu1 %v1770_v58  ;;  %v251_v58 = vld [vmem:[%s4014_s1 + $0x6a8] sm:$0xff]  ;;  %v1664_v61 = vpack.c.bf16 %v242_v53, %v238_v52  ;;  %v1792_v62 = vpack.c.bf16 %v244_v56, %v240_v54  ;;  %v284_v52 = vld [vmem:[%s4014_s1 + $0x7b0] sm:$0xff]  ;;  %v293_v56 = vld [vmem:[%s4014_s1 + $0x7f8] sm:$0xff] }
  0x55   :  { %v1666_v63 = vpack.c.bf16 %v251_v58, %v247_v57  ;;  %v287_v53 = vld [vmem:[%s4014_s1 + $0x7c8] sm:$0xff] }
  0x56   :  { %1645 = vmatpush1.bf16.msra.mxu0 %v1644_v0  ;;  %v246_v0 = vld [vmem:[%s4014_s1 + $0x680] sm:$0xff]  ;;  %v291_v54 = vld [vmem:[%s4014_s1 + $0x7e8] sm:$0xff] }
  0x57   :  { %1773 = vmatpush1.bf16.msra.mxu1 %v1772_v1  ;;  %1647 = vmatprep.subr.bf16.mxu0 %v1646_v2  ;;  %v250_v1 = vld [vmem:[%s4014_s1 + $0x6a0] sm:$0xff]  ;;  %v248_v2 = vld [vmem:[%s4014_s1 + $0x690] sm:$0xff]  ;;  %v1686_v59 = vpack.c.bf16 %v291_v54, %v287_v53  ;;  %v643_v53 = vld [vmem:[%s4016_s3 + $0x138] sm:$0xff] }
  0x58   :  { %1775 = vmatprep.subr.bf16.mxu1 %v1774_v6  ;;  %v259_v6 = vld [vmem:[%s4014_s1 + $0x6e8] sm:$0xff]  ;;  %v1668_v9 = vpack.c.bf16 %v250_v1, %v246_v0  ;;  %v1796_v10 = vpack.c.bf16 %v252_v4, %v248_v2  ;;  %v292_v0 = vld [vmem:[%s4014_s1 + $0x7f0] sm:$0xff]  ;;  %v611_v4 = vld [vmem:[%s4016_s3 + $0x38] sm:$0xff] }
  0x59   :  { %v1670_v11 = vpack.c.bf16 %v259_v6, %v255_v5  ;;  %v605_v1 = vld [vmem:[%s4016_s3 + $0x8] sm:$0xff] }
  0x5a   :  { %1649 = vmatpush1.bf16.msra.mxu0 %v1648_v12  ;;  %v254_v12 = vld [vmem:[%s4014_s1 + $0x6c0] sm:$0xff]  ;;  %v609_v2 = vld [vmem:[%s4016_s3 + $0x28] sm:$0xff] }
  0x5b   :  { %1777 = vmatpush1.bf16.msra.mxu1 %v1776_v14  ;;  %1651 = vmatprep.subr.bf16.mxu0 %v1650_v15  ;;  %v256_v14 = vld [vmem:[%s4014_s1 + $0x6d0] sm:$0xff]  ;;  %v1798_v15 = vpack.c.bf16 %v261_v8, %v257_v7  ;;  %v1672_v21 = vpack.c.bf16 %v258_v13, %v254_v12  ;;  %v1818_v7 = vpack.c.bf16 %v609_v2, %v605_v1  ;;  %v604_v8 = vld [vmem:[%s4016_s3] sm:$0xff]  ;;  %v613_v13 = vld [vmem:[%s4016_s3 + $0x48] sm:$0xff] }
  0x5c   :  { %1779 = vmatprep.subr.bf16.mxu1 %v1778_v19  ;;  %v265_v19 = vld [vmem:[%s4014_s1 + $0x718] sm:$0xff]  ;;  %v1800_v22 = vpack.c.bf16 %v260_v16, %v256_v14  ;;  %v610_v12 = vld [vmem:[%s4016_s3 + $0x30] sm:$0xff]  ;;  %v617_v14 = vld [vmem:[%s4016_s3 + $0x68] sm:$0xff] }
  0x5d   :  { %v619_v16 = vld [vmem:[%s4016_s3 + $0x78] sm:$0xff] }
  0x5e   :  { %1653 = vmatpush1.bf16.msra.mxu0 %v1652_v25  ;;  %v266_v25 = vld [vmem:[%s4014_s1 + $0x720] sm:$0xff]  ;;  %v651_v1 = vld [vmem:[%s4016_s3 + $0x178] sm:$0xff] }
  0x5f   :  { %1781 = vmatpush1.bf16.msra.mxu1 %v1780_v26  ;;  %1655 = vmatprep.subr.bf16.mxu0 %v1654_v27  ;;  %v264_v26 = vld [vmem:[%s4014_s1 + $0x710] sm:$0xff]  ;;  %v1802_v27 = vpack.c.bf16 %v269_v20, %v265_v19  ;;  %v1676_v33 = vpack.c.bf16 %v266_v25, %v262_v24  ;;  %v1822_v20 = vpack.c.bf16 %v617_v14, %v613_v13  ;;  %v659_v13 = vld [vmem:[%s4016_s3 + $0x1b8] sm:$0xff] }
  0x60   :  { %1783 = vmatprep.subr.bf16.mxu1 %v1782_v31  ;;  %v273_v31 = vld [vmem:[%s4014_s1 + $0x758] sm:$0xff]  ;;  %v1804_v34 = vpack.c.bf16 %v268_v28, %v264_v26  ;;  %v618_v25 = vld [vmem:[%s4016_s3 + $0x70] sm:$0xff]  ;;  %v621_v26 = vld [vmem:[%s4016_s3 + $0x88] sm:$0xff] }
  0x61   :  { %v623_v28 = vld [vmem:[%s4016_s3 + $0x98] sm:$0xff] }
  0x62   :  { %1657 = vmatpush1.bf16.msra.mxu0 %v1656_v37  ;;  %v274_v37 = vld [vmem:[%s4014_s1 + $0x760] sm:$0xff] }
  0x63   :  { %1785 = vmatpush1.bf16.msra.mxu1 %v1784_v38  ;;  %1659 = vmatprep.subr.bf16.mxu0 %v1658_v39  ;;  %v272_v38 = vld [vmem:[%s4014_s1 + $0x750] sm:$0xff]  ;;  %v1806_v39 = vpack.c.bf16 %v277_v32, %v273_v31  ;;  %v1680_v45 = vpack.c.bf16 %v274_v37, %v270_v36  ;;  %v1954_v36 = vpack.c.bf16 %v627_v29, %v623_v28  ;;  %v660_v29 = vld [vmem:[%s4016_s3 + $0x1c0] sm:$0xff] }
  0x64   :  { %1787 = vmatprep.subr.bf16.mxu1 %v1786_v43  ;;  %v281_v43 = vld [vmem:[%s4014_s1 + $0x798] sm:$0xff]  ;;  %v1808_v46 = vpack.c.bf16 %v276_v40, %v272_v38  ;;  %v626_v37 = vld [vmem:[%s4016_s3 + $0xb0] sm:$0xff]  ;;  %v629_v38 = vld [vmem:[%s4016_s3 + $0xc8] sm:$0xff] }
  0x65   :  { %v631_v40 = vld [vmem:[%s4016_s3 + $0xd8] sm:$0xff] }
  0x66   :  { %1661 = vmatpush1.bf16.msra.mxu0 %v1660_v49  ;;  %v282_v49 = vld [vmem:[%s4014_s1 + $0x7a0] sm:$0xff] }
  0x67   :  { %1789 = vmatpush1.bf16.msra.mxu1 %v1788_v50  ;;  %1663 = vmatprep.subr.bf16.mxu0 %v1662_v51  ;;  %v280_v50 = vld [vmem:[%s4014_s1 + $0x790] sm:$0xff]  ;;  %v1810_v51 = vpack.c.bf16 %v285_v44, %v281_v43  ;;  %v1684_v57 = vpack.c.bf16 %v282_v49, %v278_v48  ;;  %v1958_v48 = vpack.c.bf16 %v635_v41, %v631_v40  ;;  %v668_v41 = vld [vmem:[%s4016_s3 + $0x200] sm:$0xff] }
  0x68   :  { %1791 = vmatprep.subr.bf16.mxu1 %v1790_v55  ;;  %v289_v55 = vld [vmem:[%s4014_s1 + $0x7d8] sm:$0xff]  ;;  %v1812_v58 = vpack.c.bf16 %v284_v52, %v280_v50  ;;  %v634_v49 = vld [vmem:[%s4016_s3 + $0xf0] sm:$0xff]  ;;  %v637_v50 = vld [vmem:[%s4016_s3 + $0x108] sm:$0xff] }
  0x69   :  { %v639_v52 = vld [vmem:[%s4016_s3 + $0x118] sm:$0xff] }
  0x6a   :  { %1665 = vmatpush1.bf16.msra.mxu0 %v1664_v61  ;;  %v290_v61 = vld [vmem:[%s4014_s1 + $0x7e0] sm:$0xff] }
  0x6b   :  { %1793 = vmatpush1.bf16.msra.mxu1 %v1792_v62  ;;  %1667 = vmatprep.subr.bf16.mxu0 %v1666_v63  ;;  %v288_v62 = vld [vmem:[%s4014_s1 + $0x7d0] sm:$0xff]  ;;  %v1814_v63 = vpack.c.bf16 %v293_v56, %v289_v55  ;;  %v1688_v5 = vpack.c.bf16 %v290_v61, %v286_v60  ;;  %v1962_v60 = vpack.c.bf16 %v643_v53, %v639_v52  ;;  %v676_v53 = vld [vmem:[%s4016_s3 + $0x240] sm:$0xff] }
  0x6c   :  { %1795 = vmatprep.subr.bf16.mxu1 %v1794_v3  ;;  %v607_v3 = vld [vmem:[%s4016_s3 + $0x18] sm:$0xff]  ;;  %v1816_v6 = vpack.c.bf16 %v292_v0, %v288_v62  ;;  %v642_v61 = vld [vmem:[%s4016_s3 + $0x130] sm:$0xff]  ;;  %v645_v62 = vld [vmem:[%s4016_s3 + $0x148] sm:$0xff] }
  0x6d   :  { %v647_v0 = vld [vmem:[%s4016_s3 + $0x158] sm:$0xff] }
  0x6e   :  { %1669 = vmatpush1.bf16.msra.mxu0 %v1668_v9  ;;  %v608_v9 = vld [vmem:[%s4016_s3 + $0x20] sm:$0xff] }
  0x6f   :  { %1797 = vmatpush1.bf16.msra.mxu1 %v1796_v10  ;;  %1671 = vmatprep.subr.bf16.mxu0 %v1670_v11  ;;  %v606_v10 = vld [vmem:[%s4016_s3 + $0x10] sm:$0xff]  ;;  %v1946_v11 = vpack.c.bf16 %v611_v4, %v607_v3  ;;  %v1820_v18 = vpack.c.bf16 %v608_v9, %v604_v8  ;;  %v1966_v8 = vpack.c.bf16 %v651_v1, %v647_v0  ;;  %v684_v1 = vld [vmem:[%s4016_s3 + $0x280] sm:$0xff] }
  0x70   :  { %1799 = vmatprep.subr.bf16.mxu1 %v1798_v15  ;;  %v615_v15 = vld [vmem:[%s4016_s3 + $0x58] sm:$0xff]  ;;  %v1948_v19 = vpack.c.bf16 %v610_v12, %v606_v10  ;;  %v650_v9 = vld [vmem:[%s4016_s3 + $0x170] sm:$0xff]  ;;  %v653_v10 = vld [vmem:[%s4016_s3 + $0x188] sm:$0xff] }
  0x71   :  { %v1950_v24 = vpack.c.bf16 %v619_v16, %v615_v15  ;;  %v655_v12 = vld [vmem:[%s4016_s3 + $0x198] sm:$0xff] }
  0x72   :  { %1673 = vmatpush1.bf16.msra.mxu0 %v1672_v21  ;;  %v612_v21 = vld [vmem:[%s4016_s3 + $0x40] sm:$0xff] }
  0x73   :  { %1801 = vmatpush1.bf16.msra.mxu1 %v1800_v22  ;;  %1675 = vmatprep.subr.bf16.mxu0 %v1674_v23  ;;  %v616_v22 = vld [vmem:[%s4016_s3 + $0x60] sm:$0xff]  ;;  %v614_v23 = vld [vmem:[%s4016_s3 + $0x50] sm:$0xff] }
  0x74   :  { %1803 = vmatprep.subr.bf16.mxu1 %v1802_v27  ;;  %v625_v27 = vld [vmem:[%s4016_s3 + $0xa8] sm:$0xff]  ;;  %v1824_v30 = vpack.c.bf16 %v616_v22, %v612_v21  ;;  %v1952_v31 = vpack.c.bf16 %v618_v25, %v614_v23  ;;  %v658_v21 = vld [vmem:[%s4016_s3 + $0x1b0] sm:$0xff]  ;;  %v667_v25 = vld [vmem:[%s4016_s3 + $0x1f8] sm:$0xff] }
  0x75   :  { %v1826_v32 = vpack.c.bf16 %v625_v27, %v621_v26  ;;  %v661_v22 = vld [vmem:[%s4016_s3 + $0x1c8] sm:$0xff] }
  0x76   :  { %1677 = vmatpush1.bf16.msra.mxu0 %v1676_v33  ;;  %v620_v33 = vld [vmem:[%s4016_s3 + $0x80] sm:$0xff]  ;;  %v665_v23 = vld [vmem:[%s4016_s3 + $0x1e8] sm:$0xff] }
  0x77   :  { %1805 = vmatpush1.bf16.msra.mxu1 %v1804_v34  ;;  %1679 = vmatprep.subr.bf16.mxu0 %v1678_v35  ;;  %v624_v34 = vld [vmem:[%s4016_s3 + $0xa0] sm:$0xff]  ;;  %v622_v35 = vld [vmem:[%s4016_s3 + $0x90] sm:$0xff]  ;;  %v1846_v28 = vpack.c.bf16 %v665_v23, %v661_v22 }
  0x78   :  { %1807 = vmatprep.subr.bf16.mxu1 %v1806_v39  ;;  %v633_v39 = vld [vmem:[%s4016_s3 + $0xe8] sm:$0xff]  ;;  %v1828_v42 = vpack.c.bf16 %v624_v34, %v620_v33  ;;  %v1956_v43 = vpack.c.bf16 %v626_v37, %v622_v35  ;;  %v666_v33 = vld [vmem:[%s4016_s3 + $0x1f0] sm:$0xff]  ;;  %v675_v37 = vld [vmem:[%s4016_s3 + $0x238] sm:$0xff] }
  0x79   :  { %v1830_v44 = vpack.c.bf16 %v633_v39, %v629_v38  ;;  %v669_v34 = vld [vmem:[%s4016_s3 + $0x208] sm:$0xff] }
  0x7a   :  { %1681 = vmatpush1.bf16.msra.mxu0 %v1680_v45  ;;  %v628_v45 = vld [vmem:[%s4016_s3 + $0xc0] sm:$0xff]  ;;  %v673_v35 = vld [vmem:[%s4016_s3 + $0x228] sm:$0xff] }
  0x7b   :  { %1809 = vmatpush1.bf16.msra.mxu1 %v1808_v46  ;;  %1683 = vmatprep.subr.bf16.mxu0 %v1682_v47  ;;  %v632_v46 = vld [vmem:[%s4016_s3 + $0xe0] sm:$0xff]  ;;  %v630_v47 = vld [vmem:[%s4016_s3 + $0xd0] sm:$0xff]  ;;  %v1850_v40 = vpack.c.bf16 %v673_v35, %v669_v34 }
  0x7c   :  { %1811 = vmatprep.subr.bf16.mxu1 %v1810_v51  ;;  %v641_v51 = vld [vmem:[%s4016_s3 + $0x128] sm:$0xff]  ;;  %v1832_v54 = vpack.c.bf16 %v632_v46, %v628_v45  ;;  %v1960_v55 = vpack.c.bf16 %v634_v49, %v630_v47  ;;  %v674_v45 = vld [vmem:[%s4016_s3 + $0x230] sm:$0xff]  ;;  %v683_v49 = vld [vmem:[%s4016_s3 + $0x278] sm:$0xff] }
  0x7d   :  { %v1834_v56 = vpack.c.bf16 %v641_v51, %v637_v50  ;;  %v677_v46 = vld [vmem:[%s4016_s3 + $0x248] sm:$0xff] }
  0x7e   :  { %1685 = vmatpush1.bf16.msra.mxu0 %v1684_v57  ;;  %v636_v57 = vld [vmem:[%s4016_s3 + $0x100] sm:$0xff]  ;;  %v681_v47 = vld [vmem:[%s4016_s3 + $0x268] sm:$0xff] }
  0x7f   :  { %1813 = vmatpush1.bf16.msra.mxu1 %v1812_v58  ;;  %1687 = vmatprep.subr.bf16.mxu0 %v1686_v59  ;;  %v640_v58 = vld [vmem:[%s4016_s3 + $0x120] sm:$0xff]  ;;  %v638_v59 = vld [vmem:[%s4016_s3 + $0x110] sm:$0xff]  ;;  %v1854_v52 = vpack.c.bf16 %v681_v47, %v677_v46 }
  0x80   :  { %1815 = vmatprep.subr.bf16.mxu1 %v1814_v63  ;;  %v649_v63 = vld [vmem:[%s4016_s3 + $0x168] sm:$0xff]  ;;  %v1836_v2 = vpack.c.bf16 %v640_v58, %v636_v57  ;;  %v1964_v3 = vpack.c.bf16 %v642_v61, %v638_v59  ;;  %v682_v57 = vld [vmem:[%s4016_s3 + $0x270] sm:$0xff]  ;;  %v691_v61 = vld [vmem:[%s4016_s3 + $0x2b8] sm:$0xff] }
  0x81   :  { %v1838_v4 = vpack.c.bf16 %v649_v63, %v645_v62  ;;  %v685_v58 = vld [vmem:[%s4016_s3 + $0x288] sm:$0xff] }
  0x82   :  { %1689 = vmatpush1.bf16.msra.mxu0 %v1688_v5  ;;  %v644_v5 = vld [vmem:[%s4016_s3 + $0x140] sm:$0xff]  ;;  %v689_v59 = vld [vmem:[%s4016_s3 + $0x2a8] sm:$0xff] }
  0x83   :  { %1817 = vmatpush1.bf16.msra.mxu1 %v1816_v6  ;;  %1819 = vmatprep.subr.bf16.mxu0 %v1818_v7  ;;  %v648_v6 = vld [vmem:[%s4016_s3 + $0x160] sm:$0xff]  ;;  %v646_v7 = vld [vmem:[%s4016_s3 + $0x150] sm:$0xff]  ;;  %v1858_v0 = vpack.c.bf16 %v689_v59, %v685_v58  ;;  %v727_v58 = vld [vmem:[%s4016_s3 + $0x3d8] sm:$0xff] }
  0x84   :  { %1947 = vmatprep.subr.bf16.mxu1 %v1946_v11  ;;  %v657_v11 = vld [vmem:[%s4016_s3 + $0x1a8] sm:$0xff]  ;;  %v1840_v14 = vpack.c.bf16 %v648_v6, %v644_v5  ;;  %v1968_v15 = vpack.c.bf16 %v650_v9, %v646_v7  ;;  %v690_v5 = vld [vmem:[%s4016_s3 + $0x2b0] sm:$0xff]  ;;  %v699_v9 = vld [vmem:[%s4016_s3 + $0x2f8] sm:$0xff] }
  0x85   :  { %452 = vmatmul.mubr.f32.vlgmr.msra.gmra.mrb[0].mxu0 %v36_v17  ;;  %v1842_v16 = vpack.c.bf16 %v657_v11, %v653_v10  ;;  %v693_v6 = vld [vmem:[%s4016_s3 + $0x2c8] sm:$0xff] }
  0x86   :  { %594 = vmatmul.mubr.f32.vlgmr.msra.gmra.mrb[0].mxu1 %v36_v17  ;;  %1821 = vmatpush1.bf16.msra.mxu0 %v1820_v18  ;;  %v652_v17 = vld [vmem:[%s4016_s3 + $0x180] sm:$0xff]  ;;  %v697_v7 = vld [vmem:[%s4016_s3 + $0x2e8] sm:$0xff] }
  0x87   :  { %1949 = vmatpush1.bf16.msra.mxu1 %v1948_v19  ;;  %1823 = vmatprep.subr.bf16.mxu0 %v1822_v20  ;;  %v656_v18 = vld [vmem:[%s4016_s3 + $0x1a0] sm:$0xff]  ;;  %v654_v19 = vld [vmem:[%s4016_s3 + $0x190] sm:$0xff]  ;;  %v1970_v20 = vpack.c.bf16 %v659_v13, %v655_v12  ;;  %v1862_v12 = vpack.c.bf16 %v697_v7, %v693_v6  ;;  %v735_v6 = vld [vmem:[%s4016_s3 + $0x418] sm:$0xff] }
  0x88   :  { %1951 = vmatprep.subr.bf16.mxu1 %v1950_v24  ;;  %v663_v24 = vld [vmem:[%s4016_s3 + $0x1d8] sm:$0xff]  ;;  %v1844_v26 = vpack.c.bf16 %v656_v18, %v652_v17  ;;  %v1972_v27 = vpack.c.bf16 %v658_v21, %v654_v19  ;;  %v692_v13 = vld [vmem:[%s4016_s3 + $0x2c0] sm:$0xff]  ;;  %v698_v17 = vld [vmem:[%s4016_s3 + $0x2f0] sm:$0xff] }
  0x89   :  { %v701_v18 = vld [vmem:[%s4016_s3 + $0x308] sm:$0xff]  ;;  %v707_v21 = vld [vmem:[%s4016_s3 + $0x338] sm:$0xff] }
  0x8a   :  { %1825 = vmatpush1.bf16.msra.mxu0 %v1824_v30  ;;  %v664_v30 = vld [vmem:[%s4016_s3 + $0x1e0] sm:$0xff]  ;;  %v705_v19 = vld [vmem:[%s4016_s3 + $0x328] sm:$0xff] }
  0x8b   :  { %1953 = vmatpush1.bf16.msra.mxu1 %v1952_v31  ;;  %1827 = vmatprep.subr.bf16.mxu0 %v1826_v32  ;;  %v662_v31 = vld [vmem:[%s4016_s3 + $0x1d0] sm:$0xff]  ;;  %v1974_v32 = vpack.c.bf16 %v667_v25, %v663_v24  ;;  %v1848_v38 = vpack.c.bf16 %v664_v30, %v660_v29  ;;  %v1866_v24 = vpack.c.bf16 %v705_v19, %v701_v18  ;;  %v700_v25 = vld [vmem:[%s4016_s3 + $0x300] sm:$0xff]  ;;  %v709_v30 = vld [vmem:[%s4016_s3 + $0x348] sm:$0xff] }
  0x8c   :  { %1955 = vmatprep.subr.bf16.mxu1 %v1954_v36  ;;  %v671_v36 = vld [vmem:[%s4016_s3 + $0x218] sm:$0xff]  ;;  %v1976_v39 = vpack.c.bf16 %v666_v33, %v662_v31  ;;  %v706_v29 = vld [vmem:[%s4016_s3 + $0x330] sm:$0xff]  ;;  %v713_v31 = vld [vmem:[%s4016_s3 + $0x368] sm:$0xff] }
  0x8d   :  { %v715_v33 = vld [vmem:[%s4016_s3 + $0x378] sm:$0xff] }
  0x8e   :  { %1829 = vmatpush1.bf16.msra.mxu0 %v1828_v42  ;;  %v672_v42 = vld [vmem:[%s4016_s3 + $0x220] sm:$0xff] }
  0x8f   :  { %1957 = vmatpush1.bf16.msra.mxu1 %v1956_v43  ;;  %1831 = vmatprep.subr.bf16.mxu0 %v1830_v44  ;;  %v670_v43 = vld [vmem:[%s4016_s3 + $0x210] sm:$0xff]  ;;  %v1978_v44 = vpack.c.bf16 %v675_v37, %v671_v36  ;;  %v1852_v50 = vpack.c.bf16 %v672_v42, %v668_v41  ;;  %v1870_v36 = vpack.c.bf16 %v713_v31, %v709_v30  ;;  %v708_v37 = vld [vmem:[%s4016_s3 + $0x340] sm:$0xff]  ;;  %v717_v42 = vld [vmem:[%s4016_s3 + $0x388] sm:$0xff] }
  0x90   :  { %1959 = vmatprep.subr.bf16.mxu1 %v1958_v48  ;;  %v679_v48 = vld [vmem:[%s4016_s3 + $0x258] sm:$0xff]  ;;  %v1980_v51 = vpack.c.bf16 %v674_v45, %v670_v43  ;;  %v714_v41 = vld [vmem:[%s4016_s3 + $0x370] sm:$0xff]  ;;  %v721_v43 = vld [vmem:[%s4016_s3 + $0x3a8] sm:$0xff] }
  0x91   :  { %v723_v45 = vld [vmem:[%s4016_s3 + $0x3b8] sm:$0xff]  ;;  %v745_v31 = vld [vmem:[%s4016_s3 + $0x468] sm:$0xff] }
  0x92   :  { %1833 = vmatpush1.bf16.msra.mxu0 %v1832_v54  ;;  %v680_v54 = vld [vmem:[%s4016_s3 + $0x260] sm:$0xff] }
  0x93   :  { %1961 = vmatpush1.bf16.msra.mxu1 %v1960_v55  ;;  %1835 = vmatprep.subr.bf16.mxu0 %v1834_v56  ;;  %v678_v55 = vld [vmem:[%s4016_s3 + $0x250] sm:$0xff]  ;;  %v1982_v56 = vpack.c.bf16 %v683_v49, %v679_v48  ;;  %v1856_v62 = vpack.c.bf16 %v680_v54, %v676_v53  ;;  %v1874_v48 = vpack.c.bf16 %v721_v43, %v717_v42  ;;  %v716_v49 = vld [vmem:[%s4016_s3 + $0x380] sm:$0xff]  ;;  %v749_v42 = vld [vmem:[%s4016_s3 + $0x488] sm:$0xff] }
  0x94   :  { %1963 = vmatprep.subr.bf16.mxu1 %v1962_v60  ;;  %v687_v60 = vld [vmem:[%s4016_s3 + $0x298] sm:$0xff]  ;;  %v1984_v63 = vpack.c.bf16 %v682_v57, %v678_v55  ;;  %v722_v53 = vld [vmem:[%s4016_s3 + $0x3b0] sm:$0xff]  ;;  %v729_v57 = vld [vmem:[%s4016_s3 + $0x3e8] sm:$0xff] }
  0x96   :  { %1837 = vmatpush1.bf16.msra.mxu0 %v1836_v2  ;;  %v688_v2 = vld [vmem:[%s4016_s3 + $0x2a0] sm:$0xff] }
  0x97   :  { %1965 = vmatpush1.bf16.msra.mxu1 %v1964_v3  ;;  %1839 = vmatprep.subr.bf16.mxu0 %v1838_v4  ;;  %v686_v3 = vld [vmem:[%s4016_s3 + $0x290] sm:$0xff]  ;;  %v1986_v4 = vpack.c.bf16 %v691_v61, %v687_v60  ;;  %v1860_v10 = vpack.c.bf16 %v688_v2, %v684_v1  ;;  %v731_v60 = vld [vmem:[%s4016_s3 + $0x3f8] sm:$0xff]  ;;  %v724_v61 = vld [vmem:[%s4016_s3 + $0x3c0] sm:$0xff] }
  0x98   :  { %1967 = vmatprep.subr.bf16.mxu1 %v1966_v8  ;;  %v695_v8 = vld [vmem:[%s4016_s3 + $0x2d8] sm:$0xff]  ;;  %v1988_v11 = vpack.c.bf16 %v690_v5, %v686_v3  ;;  %v726_v1 = vld [vmem:[%s4016_s3 + $0x3d0] sm:$0xff]  ;;  %v737_v5 = vld [vmem:[%s4016_s3 + $0x428] sm:$0xff] }
  0x99   :  { %v730_v2 = vld [vmem:[%s4016_s3 + $0x3f0] sm:$0xff] }
  0x9a   :  { %1841 = vmatpush1.bf16.msra.mxu0 %v1840_v14  ;;  %v696_v14 = vld [vmem:[%s4016_s3 + $0x2e0] sm:$0xff]  ;;  %v2008_v3 = vpack.c.bf16 %v730_v2, %v726_v1 }
  0x9b   :  { %1969 = vmatpush1.bf16.msra.mxu1 %v1968_v15  ;;  %1843 = vmatprep.subr.bf16.mxu0 %v1842_v16  ;;  %v694_v15 = vld [vmem:[%s4016_s3 + $0x2d0] sm:$0xff]  ;;  %v1990_v16 = vpack.c.bf16 %v699_v9, %v695_v8  ;;  %v1864_v22 = vpack.c.bf16 %v696_v14, %v692_v13  ;;  %v739_v8 = vld [vmem:[%s4016_s3 + $0x438] sm:$0xff]  ;;  %v3398_v13 = vld [vmem:[%s4017_s2] sm:$0xf] }
  0x9c   :  { %1971 = vmatprep.subr.bf16.mxu1 %v1970_v20  ;;  %v703_v20 = vld [vmem:[%s4016_s3 + $0x318] sm:$0xff]  ;;  %v1992_v23 = vpack.c.bf16 %v698_v17, %v694_v15  ;;  %v2010_v9 = vpack.c.bf16 %v739_v8, %v735_v6  ;;  %v769_v6 = vld [vmem:[%s4016_s3 + $0x528] sm:$0xff] }
  0x9d   :  { %v771_v8 = vld [vmem:[%s4016_s3 + $0x538] sm:$0xff] }
  0x9e   :  { %1845 = vmatpush1.bf16.msra.mxu0 %v1844_v26  ;;  %v704_v26 = vld [vmem:[%s4016_s3 + $0x320] sm:$0xff] }
  0x9f   :  { %1973 = vmatpush1.bf16.msra.mxu1 %v1972_v27  ;;  %1847 = vmatprep.subr.bf16.mxu0 %v1846_v28  ;;  %v702_v27 = vld [vmem:[%s4016_s3 + $0x310] sm:$0xff]  ;;  %v1994_v28 = vpack.c.bf16 %v707_v21, %v703_v20  ;;  %v1868_v34 = vpack.c.bf16 %v704_v26, %v700_v25  ;;  %v732_v20 = vld [vmem:[%s4016_s3 + $0x400] sm:$0xff] }
  0xa0   :  { %1975 = vmatprep.subr.bf16.mxu1 %v1974_v32  ;;  %v711_v32 = vld [vmem:[%s4016_s3 + $0x358] sm:$0xff]  ;;  %v1996_v35 = vpack.c.bf16 %v706_v29, %v702_v27  ;;  %v734_v25 = vld [vmem:[%s4016_s3 + $0x410] sm:$0xff]  ;;  %v741_v29 = vld [vmem:[%s4016_s3 + $0x448] sm:$0xff] }
  0xa1   :  { %v738_v26 = vld [vmem:[%s4016_s3 + $0x430] sm:$0xff]  ;;  %v1886_v43 = vpack.c.bf16 %v745_v31, %v741_v29  ;;  %v772_v29 = vld [vmem:[%s4016_s3 + $0x540] sm:$0xff] }
  0xa2   :  { %1849 = vmatpush1.bf16.msra.mxu0 %v1848_v38  ;;  %v712_v38 = vld [vmem:[%s4016_s3 + $0x360] sm:$0xff] }
  0xa3   :  { %1977 = vmatpush1.bf16.msra.mxu1 %v1976_v39  ;;  %1851 = vmatprep.subr.bf16.mxu0 %v1850_v40  ;;  %v710_v39 = vld [vmem:[%s4016_s3 + $0x350] sm:$0xff]  ;;  %v1998_v40 = vpack.c.bf16 %v715_v33, %v711_v32  ;;  %v1872_v46 = vpack.c.bf16 %v712_v38, %v708_v37  ;;  %v743_v32 = vld [vmem:[%s4016_s3 + $0x458] sm:$0xff]  ;;  %v740_v37 = vld [vmem:[%s4016_s3 + $0x440] sm:$0xff] }
  0xa4   :  { %1979 = vmatprep.subr.bf16.mxu1 %v1978_v44  ;;  %v719_v44 = vld [vmem:[%s4016_s3 + $0x398] sm:$0xff]  ;;  %v2000_v47 = vpack.c.bf16 %v714_v41, %v710_v39  ;;  %v744_v38 = vld [vmem:[%s4016_s3 + $0x460] sm:$0xff]  ;;  %v746_v41 = vld [vmem:[%s4016_s3 + $0x470] sm:$0xff] }
  0xa5   :  { %v747_v33 = vld [vmem:[%s4016_s3 + $0x478] sm:$0xff] }
  0xa6   :  { %1853 = vmatpush1.bf16.msra.mxu0 %v1852_v50  ;;  %v720_v50 = vld [vmem:[%s4016_s3 + $0x3a0] sm:$0xff] }
  0xa7   :  { %1981 = vmatpush1.bf16.msra.mxu1 %v1980_v51  ;;  %1855 = vmatprep.subr.bf16.mxu0 %v1854_v52  ;;  %v2002_v51 = vpack.c.bf16 %v723_v45, %v719_v44  ;;  %v718_v52 = vld [vmem:[%s4016_s3 + $0x390] sm:$0xff]  ;;  %v1876_v54 = vpack.c.bf16 %v720_v50, %v716_v49  ;;  %v2014_v44 = vpack.c.bf16 %v747_v33, %v743_v32  ;;  %v753_v45 = vld [vmem:[%s4016_s3 + $0x4a8] sm:$0xff] }
  0xa8   :  { %1983 = vmatprep.subr.bf16.mxu1 %v1982_v56  ;;  %v2004_v55 = vpack.c.bf16 %v722_v53, %v718_v52  ;;  %v725_v56 = vld [vmem:[%s4016_s3 + $0x3c8] sm:$0xff]  ;;  %v1888_v49 = vpack.c.bf16 %v744_v38, %v740_v37  ;;  %v752_v52 = vld [vmem:[%s4016_s3 + $0x4a0] sm:$0xff]  ;;  %v1890_v53 = vpack.c.bf16 %v753_v45, %v749_v42  ;;  %v774_v33 = vld [vmem:[%s4016_s3 + $0x550] sm:$0xff] }
  0xa9   :  { %v1878_v59 = vpack.c.bf16 %v729_v57, %v725_v56  ;;  %v754_v56 = vld [vmem:[%s4016_s3 + $0x4b0] sm:$0xff]  ;;  %v757_v57 = vld [vmem:[%s4016_s3 + $0x4c8] sm:$0xff]  ;;  %v783_v37 = vld [vmem:[%s4016_s3 + $0x598] sm:$0xff] }
  0xaa   :  { %1857 = vmatpush1.bf16.msra.mxu0 %v1856_v62  ;;  %v728_v62 = vld [vmem:[%s4016_s3 + $0x3e0] sm:$0xff]  ;;  %v787_v38 = vld [vmem:[%s4016_s3 + $0x5b8] sm:$0xff]  ;;  %v782_v45 = vld [vmem:[%s4016_s3 + $0x590] sm:$0xff] }
  0xab   :  { %1985 = vmatpush1.bf16.msra.mxu1 %v1984_v63  ;;  %1859 = vmatprep.subr.bf16.mxu0 %v1858_v0  ;;  %v2006_v63 = vpack.c.bf16 %v731_v60, %v727_v58  ;;  %v1880_v0 = vpack.c.bf16 %v728_v62, %v724_v61  ;;  %v761_v58 = vld [vmem:[%s4016_s3 + $0x4e8] sm:$0xff]  ;;  %v763_v60 = vld [vmem:[%s4016_s3 + $0x4f8] sm:$0xff]  ;;  %v784_v42 = vld [vmem:[%s4016_s3 + $0x5a0] sm:$0xff] }
  0xac   :  { %1987 = vmatprep.subr.bf16.mxu1 %v1986_v4  ;;  %v733_v4 = vld [vmem:[%s4016_s3 + $0x408] sm:$0xff]  ;;  %v1894_v1 = vpack.c.bf16 %v761_v58, %v757_v57  ;;  %v790_v57 = vld [vmem:[%s4016_s3 + $0x5d0] sm:$0xff] }
  0xad   :  { %v1882_v7 = vpack.c.bf16 %v737_v5, %v733_v4  ;;  %v762_v4 = vld [vmem:[%s4016_s3 + $0x4f0] sm:$0xff]  ;;  %v765_v5 = vld [vmem:[%s4016_s3 + $0x508] sm:$0xff] }
  0xae   :  { %1861 = vmatpush1.bf16.msra.mxu0 %v1860_v10  ;;  %v296_v10 = vlaneseq  ;;  %v794_v58 = vld [vmem:[%s4016_s3 + $0x5f0] sm:$0xff] }
  0xaf   :  { %1989 = vmatpush1.bf16.msra.mxu1 %v1988_v11  ;;  %1863 = vmatprep.subr.bf16.mxu0 %v1862_v12 }
  0xb0   :  { %1991 = vmatprep.subr.bf16.mxu1 %v1990_v16  ;;  %v3392_v11 = vshrl.u32 %v296_v10, 7 }
  0xb2   :  { %1865 = vmatpush1.bf16.msra.mxu0 %v1864_v22  ;;  %v298_v12 = vsub.s32 0, %v3392_v11  ;;  %v302_v14 = vsub.s32 1, %v3392_v11  ;;  %v310_v15 = vsub.s32 3, %v3392_v11 }
  0xb3   :  { %1993 = vmatpush1.bf16.msra.mxu1 %v1992_v23  ;;  %1867 = vmatprep.subr.bf16.mxu0 %v1866_v24  ;;  %v736_v24 = vld [vmem:[%s4016_s3 + $0x420] sm:$0xff] }
  0xb4   :  { %1995 = vmatprep.subr.bf16.mxu1 %v1994_v28  ;;  %v299_v16 = vrot.slane %v3398_v13, %v298_v12  ;;  %v303_v17 = vrot.slane %v3398_v13, %v302_v14  ;;  %v311_v18 = vrot.slane %v3398_v13, %v310_v15 }
  0xb6   :  { %1869 = vmatpush1.bf16.msra.mxu0 %v1868_v34 }
  0xb7   :  { %1997 = vmatpush1.bf16.msra.mxu1 %v1996_v35  ;;  %1871 = vmatprep.subr.bf16.mxu0 %v1870_v36  ;;  %v1884_v35 = vpack.c.bf16 %v736_v24, %v732_v20  ;;  %v2012_v36 = vpack.c.bf16 %v738_v26, %v734_v25  ;;  %v766_v20 = vld [vmem:[%s4016_s3 + $0x510] sm:$0xff]  ;;  %v777_v24 = vld [vmem:[%s4016_s3 + $0x568] sm:$0xff]  ;;  %v775_v25 = vld [vmem:[%s4016_s3 + $0x558] sm:$0xff] }
  0xb8   :  { %1999 = vmatprep.subr.bf16.mxu1 %v1998_v40  ;;  %v742_v40 = vld [vmem:[%s4016_s3 + $0x450] sm:$0xff]  ;;  %v779_v26 = vld [vmem:[%s4016_s3 + $0x578] sm:$0xff] }
  0xb9   :  { %v2016_v50 = vpack.c.bf16 %v746_v41, %v742_v40  ;;  %v2030_v32 = vpack.c.bf16 %v779_v26, %v775_v25  ;;  %v780_v41 = vld [vmem:[%s4016_s3 + $0x580] sm:$0xff]  ;;  %v813_v25 = vld [vmem:[%s4016_s3 + $0x688] sm:$0xff] }
  0xba   :  { %1873 = vmatpush1.bf16.msra.mxu0 %v1872_v46  ;;  %v751_v46 = vld [vmem:[%s4016_s3 + $0x498] sm:$0xff]  ;;  %v817_v26 = vld [vmem:[%s4016_s3 + $0x6a8] sm:$0xff] }
  0xbb   :  { %2001 = vmatpush1.bf16.msra.mxu1 %v2000_v47  ;;  %1875 = vmatprep.subr.bf16.mxu0 %v1874_v48  ;;  %v755_v47 = vld [vmem:[%s4016_s3 + $0x4b8] sm:$0xff] }
  0xbc   :  { %2003 = vmatprep.subr.bf16.mxu1 %v2002_v51  ;;  %v748_v51 = vld [vmem:[%s4016_s3 + $0x480] sm:$0xff] }
  0xbd   :  { %v1892_v61 = vpack.c.bf16 %v752_v52, %v748_v51  ;;  %v1908_v51 = vpack.c.bf16 %v784_v42, %v780_v41 }
  0xbe   :  { %1877 = vmatpush1.bf16.msra.mxu0 %v1876_v54  ;;  %v2018_v54 = vpack.c.bf16 %v755_v47, %v751_v46  ;;  %v786_v46 = vld [vmem:[%s4016_s3 + $0x5b0] sm:$0xff]  ;;  %v789_v47 = vld [vmem:[%s4016_s3 + $0x5c8] sm:$0xff] }
  0xbf   :  { %2005 = vmatpush1.bf16.msra.mxu1 %v2004_v55  ;;  %1879 = vmatprep.subr.bf16.mxu0 %v1878_v59  ;;  %v750_v55 = vld [vmem:[%s4016_s3 + $0x490] sm:$0xff]  ;;  %v759_v59 = vld [vmem:[%s4016_s3 + $0x4d8] sm:$0xff]  ;;  %v2036_v52 = vpack.c.bf16 %v786_v46, %v782_v45 }
  0xc0   :  { %2007 = vmatprep.subr.bf16.mxu1 %v2006_v63  ;;  %v2020_v62 = vpack.c.bf16 %v754_v56, %v750_v55  ;;  %v756_v63 = vld [vmem:[%s4016_s3 + $0x4c0] sm:$0xff]  ;;  %v2022_v2 = vpack.c.bf16 %v763_v60, %v759_v59  ;;  %v797_v59 = vld [vmem:[%s4016_s3 + $0x608] sm:$0xff] }
  0xc1   :  { %v801_v60 = vld [vmem:[%s4016_s3 + $0x628] sm:$0xff] }
  0xc2   :  { %1881 = vmatpush1.bf16.msra.mxu0 %v1880_v0  ;;  %v760_v0 = vld [vmem:[%s4016_s3 + $0x4e0] sm:$0xff] }
  0xc3   :  { %2009 = vmatpush1.bf16.msra.mxu1 %v2008_v3  ;;  %1883 = vmatprep.subr.bf16.mxu0 %v1882_v7  ;;  %v758_v3 = vld [vmem:[%s4016_s3 + $0x4d0] sm:$0xff]  ;;  %v767_v7 = vld [vmem:[%s4016_s3 + $0x518] sm:$0xff] }
  0xc4   :  { %2011 = vmatprep.subr.bf16.mxu1 %v2010_v9  ;;  %v1896_v9 = vpack.c.bf16 %v760_v0, %v756_v63  ;;  %v2024_v10 = vpack.c.bf16 %v762_v4, %v758_v3  ;;  %v2040_v0 = vpack.c.bf16 %v794_v58, %v790_v57  ;;  %v1914_v3 = vpack.c.bf16 %v801_v60, %v797_v59  ;;  %v830_v59 = vld [vmem:[%s4016_s3 + $0x710] sm:$0xff] }
  0xc5   :  { %v834_v60 = vld [vmem:[%s4016_s3 + $0x730] sm:$0xff] }
 0x158   :  { %v453_v19 = vpop.f32.mrb[0].mxu0 }
 0x159   :  { %v2144_v21 = vadd.f32 %v453_v19, %v299_v16  ;;  %v3414_v22 = vpop.f32.mrb[0].mxu1  ;;  %v455_v23 = vpop.f32.mrb[1].mxu0  ;;  %v764_v16 = vld [vmem:[%s4016_s3 + $0x500] sm:$0xff]  ;;  %v2026_v19 = vpack.c.bf16 %v771_v8, %v767_v7  ;;  %v805_v7 = vld [vmem:[%s4016_s3 + $0x648] sm:$0xff] }
 0x15a   :  { %v2145_v27 = vadd.f32 %v455_v23, %v303_v17  ;;  %v597_v28 = vpop.f32.mrb[1].mxu1  ;;  %v768_v17 = vld [vmem:[%s4016_s3 + $0x520] sm:$0xff]  ;;  %v773_v23 = vld [vmem:[%s4016_s3 + $0x548] sm:$0xff] }
 0x15b   :  { %v2147_v30 = vadd.f32 %v597_v28, %v311_v18  ;;  %v600_v39 = vmax.f32 %v2144_v21, 0.0  ;;  %v1898_v18 = vpack.c.bf16 %v769_v6, %v765_v5  ;;  %v770_v21 = vld [vmem:[%s4016_s3 + $0x530] sm:$0xff]  ;;  %v1902_v31 = vpack.c.bf16 %v777_v24, %v773_v23  ;;  %v809_v8 = vld [vmem:[%s4016_s3 + $0x668] sm:$0xff] }
 0x15c   :  { %v601_v34 = vmax.f32 %v2145_v27, 0.0  ;;  %v1900_v27 = vpack.c.bf16 %v768_v17, %v764_v16  ;;  %v2028_v28 = vpack.c.bf16 %v770_v21, %v766_v20  ;;  %v798_v5 = vld [vmem:[%s4016_s3 + $0x610] sm:$0xff]  ;;  %v1918_v20 = vpack.c.bf16 %v809_v8, %v805_v7 }
 0x15d   :  { %v603_v48 = vmax.f32 %v2147_v30, 0.0  ;;  %v776_v30 = vld [vmem:[%s4016_s3 + $0x560] sm:$0xff]  ;;  %v802_v6 = vld [vmem:[%s4016_s3 + $0x630] sm:$0xff] }
 0x15e   :  { %946 = vmatprep.mubr.f32.mxu0 %v601_v34  ;;  %1088 = vmatprep.mubr.f32.mxu1 %v601_v34  ;;  %v778_v34 = vld [vmem:[%s4016_s3 + $0x570] sm:$0xff]  ;;  %v2044_v17 = vpack.c.bf16 %v802_v6, %v798_v5 }
 0x15f   :  { %947 = vmatmul.mubr.f32.vlgmr.msra.gmra.mrb[2].mxu0 %v600_v39  ;;  %1089 = vmatmul.mubr.f32.vlgmr.msra.gmra.mrb[2].mxu1 %v600_v39  ;;  %v1904_v39 = vpack.c.bf16 %v776_v30, %v772_v29  ;;  %v2032_v40 = vpack.c.bf16 %v778_v34, %v774_v33  ;;  %v806_v23 = vld [vmem:[%s4016_s3 + $0x650] sm:$0xff]  ;;  %v1922_v33 = vpack.c.bf16 %v817_v26, %v813_v25 }
 0x160   :  { %1885 = vmatpush1.bf16.msra.mxu0 %v1884_v35  ;;  %2013 = vmatpush1.bf16.msra.mxu1 %v2012_v36  ;;  %v781_v35 = vld [vmem:[%s4016_s3 + $0x588] sm:$0xff]  ;;  %v810_v24 = vld [vmem:[%s4016_s3 + $0x670] sm:$0xff] }
 0x161   :  { %1017 = vmatprep.mubr.f32.mxu0 %v603_v48  ;;  %1159 = vmatprep.mubr.f32.mxu1 %v603_v48  ;;  %v785_v36 = vld [vmem:[%s4016_s3 + $0x5a8] sm:$0xff]  ;;  %v2048_v30 = vpack.c.bf16 %v810_v24, %v806_v23  ;;  %v838_v7 = vld [vmem:[%s4016_s3 + $0x750] sm:$0xff]  ;;  %v306_v23 = vsub.s32 2, %v3392_v11  ;;  %v1382_v11 = vld [vmem:[%s4020_s7] sm:$0xff] }
 0x162   :  { %1887 = vmatprep.subr.bf16.mxu0 %v1886_v43  ;;  %2015 = vmatprep.subr.bf16.mxu1 %v2014_v44  ;;  %v1906_v43 = vpack.c.bf16 %v785_v36, %v781_v35  ;;  %v2034_v44 = vpack.c.bf16 %v787_v38, %v783_v37  ;;  %v793_v48 = vld [vmem:[%s4016_s3 + $0x5e8] sm:$0xff]  ;;  %v814_v35 = vld [vmem:[%s4016_s3 + $0x690] sm:$0xff] }
 0x163   :  { %v1910_v55 = vpack.c.bf16 %v793_v48, %v789_v47  ;;  %v818_v36 = vld [vmem:[%s4016_s3 + $0x6b0] sm:$0xff]  ;;  %v821_v37 = vld [vmem:[%s4016_s3 + $0x6c8] sm:$0xff] }
 0x164   :  { %1889 = vmatpush1.bf16.msra.mxu0 %v1888_v49  ;;  %2017 = vmatpush1.bf16.msra.mxu1 %v2016_v50  ;;  %v791_v49 = vld [vmem:[%s4016_s3 + $0x5d8] sm:$0xff]  ;;  %v825_v38 = vld [vmem:[%s4016_s3 + $0x6e8] sm:$0xff]  ;;  %v2052_v42 = vpack.c.bf16 %v818_v36, %v814_v35  ;;  %v822_v47 = vld [vmem:[%s4016_s3 + $0x6d0] sm:$0xff]  ;;  %v307_v36 = vrot.slane %v3398_v13, %v306_v23 }
 0x165   :  { %1891 = vmatprep.subr.bf16.mxu0 %v1890_v53  ;;  %2019 = vmatprep.subr.bf16.mxu1 %v2018_v54  ;;  %v795_v50 = vld [vmem:[%s4016_s3 + $0x5f8] sm:$0xff]  ;;  %v788_v53 = vld [vmem:[%s4016_s3 + $0x5c0] sm:$0xff]  ;;  %v1926_v45 = vpack.c.bf16 %v825_v38, %v821_v37  ;;  %v826_v48 = vld [vmem:[%s4016_s3 + $0x6f0] sm:$0xff] }
 0x166   :  { %v792_v54 = vld [vmem:[%s4016_s3 + $0x5e0] sm:$0xff]  ;;  %v2038_v56 = vpack.c.bf16 %v795_v50, %v791_v49  ;;  %v829_v49 = vld [vmem:[%s4016_s3 + $0x708] sm:$0xff]  ;;  %v842_v8 = vld [vmem:[%s4016_s3 + $0x770] sm:$0xff] }
 0x167   :  { %v1912_v63 = vpack.c.bf16 %v792_v54, %v788_v53  ;;  %v833_v50 = vld [vmem:[%s4016_s3 + $0x728] sm:$0xff]  ;;  %v2056_v54 = vpack.c.bf16 %v826_v48, %v822_v47  ;;  %v846_v26 = vld [vmem:[%s4016_s3 + $0x790] sm:$0xff]  ;;  %v856_v35 = vld [vmem:[%s4016_s3 + $0x7e0] sm:$0xff]  ;;  %v2146_v48 = vadd.f32 %v3414_v22, %v307_v36 }
 0x168   :  { %1893 = vmatpush1.bf16.msra.mxu0 %v1892_v61  ;;  %2021 = vmatpush1.bf16.msra.mxu1 %v2020_v62  ;;  %v799_v61 = vld [vmem:[%s4016_s3 + $0x618] sm:$0xff]  ;;  %v1930_v57 = vpack.c.bf16 %v833_v50, %v829_v49  ;;  %v1187_v13 = vld [vmem:[%s4018_s5 + $0x88] sm:$0xff] }
 0x169   :  { %1895 = vmatprep.subr.bf16.mxu0 %v1894_v1  ;;  %2023 = vmatprep.subr.bf16.mxu1 %v2022_v2  ;;  %v803_v62 = vld [vmem:[%s4016_s3 + $0x638] sm:$0xff]  ;;  %v796_v1 = vld [vmem:[%s4016_s3 + $0x600] sm:$0xff]  ;;  %v1171_v47 = vld [vmem:[%s4018_s5 + $0x8] sm:$0xff] }
 0x16a   :  { %v800_v2 = vld [vmem:[%s4016_s3 + $0x620] sm:$0xff]  ;;  %v2042_v4 = vpack.c.bf16 %v803_v62, %v799_v61  ;;  %v837_v61 = vld [vmem:[%s4016_s3 + $0x748] sm:$0xff]  ;;  %v1189_v22 = vld [vmem:[%s4018_s5 + $0x98] sm:$0xff] }
 0x16b   :  { %v1916_v16 = vpack.c.bf16 %v800_v2, %v796_v1  ;;  %v841_v62 = vld [vmem:[%s4016_s3 + $0x768] sm:$0xff]  ;;  %v2060_v2 = vpack.c.bf16 %v834_v60, %v830_v59  ;;  %v1173_v59 = vld [vmem:[%s4018_s5 + $0x18] sm:$0xff]  ;;  %v602_v60 = vmax.f32 %v2146_v48, 0.0 }
 0x16c   :  { %1897 = vmatpush1.bf16.msra.mxu0 %v1896_v9  ;;  %2025 = vmatpush1.bf16.msra.mxu1 %v2024_v10  ;;  %v807_v9 = vld [vmem:[%s4016_s3 + $0x658] sm:$0xff]  ;;  %v1934_v5 = vpack.c.bf16 %v841_v62, %v837_v61 }
 0x16d   :  { %1899 = vmatprep.subr.bf16.mxu0 %v1898_v18  ;;  %2027 = vmatprep.subr.bf16.mxu1 %v2026_v19  ;;  %v811_v10 = vld [vmem:[%s4016_s3 + $0x678] sm:$0xff]  ;;  %v804_v18 = vld [vmem:[%s4016_s3 + $0x640] sm:$0xff] }
 0x16e   :  { %v808_v19 = vld [vmem:[%s4016_s3 + $0x660] sm:$0xff]  ;;  %v2046_v21 = vpack.c.bf16 %v811_v10, %v807_v9  ;;  %v845_v9 = vld [vmem:[%s4016_s3 + $0x788] sm:$0xff] }
 0x16f   :  { %v1920_v29 = vpack.c.bf16 %v808_v19, %v804_v18  ;;  %v849_v10 = vld [vmem:[%s4016_s3 + $0x7a8] sm:$0xff]  ;;  %v2064_v19 = vpack.c.bf16 %v842_v8, %v838_v7  ;;  %v1174_v7 = vld [vmem:[%s4018_s5 + $0x20] sm:$0xff] }
 0x170   :  { %1901 = vmatpush1.bf16.msra.mxu0 %v1900_v27  ;;  %2029 = vmatpush1.bf16.msra.mxu1 %v2028_v28  ;;  %v815_v27 = vld [vmem:[%s4016_s3 + $0x698] sm:$0xff]  ;;  %v1938_v24 = vpack.c.bf16 %v849_v10, %v845_v9  ;;  %v1175_v8 = vld [vmem:[%s4018_s5 + $0x28] sm:$0xff] }
 0x171   :  { %1903 = vmatprep.subr.bf16.mxu0 %v1902_v31  ;;  %2031 = vmatprep.subr.bf16.mxu1 %v2030_v32  ;;  %v819_v28 = vld [vmem:[%s4016_s3 + $0x6b8] sm:$0xff]  ;;  %v812_v31 = vld [vmem:[%s4016_s3 + $0x680] sm:$0xff] }
 0x172   :  { %v816_v32 = vld [vmem:[%s4016_s3 + $0x6a0] sm:$0xff]  ;;  %v2050_v34 = vpack.c.bf16 %v819_v28, %v815_v27  ;;  %v850_v27 = vld [vmem:[%s4016_s3 + $0x7b0] sm:$0xff]  ;;  %v853_v28 = vld [vmem:[%s4016_s3 + $0x7c8] sm:$0xff] }
 0x173   :  { %v1924_v41 = vpack.c.bf16 %v816_v32, %v812_v31  ;;  %v859_v31 = vld [vmem:[%s4016_s3 + $0x7f8] sm:$0xff] }
 0x174   :  { %1905 = vmatpush1.bf16.msra.mxu0 %v1904_v39  ;;  %2033 = vmatpush1.bf16.msra.mxu1 %v2032_v40  ;;  %v823_v39 = vld [vmem:[%s4016_s3 + $0x6d8] sm:$0xff] }
 0x175   :  { %1907 = vmatprep.subr.bf16.mxu0 %v1906_v43  ;;  %2035 = vmatprep.subr.bf16.mxu1 %v2034_v44  ;;  %v827_v40 = vld [vmem:[%s4016_s3 + $0x6f8] sm:$0xff]  ;;  %v820_v43 = vld [vmem:[%s4016_s3 + $0x6c0] sm:$0xff] }
 0x176   :  { %v824_v44 = vld [vmem:[%s4016_s3 + $0x6e0] sm:$0xff]  ;;  %v2054_v46 = vpack.c.bf16 %v827_v40, %v823_v39  ;;  %v854_v39 = vld [vmem:[%s4016_s3 + $0x7d0] sm:$0xff] }
 0x177   :  { %v1928_v53 = vpack.c.bf16 %v824_v44, %v820_v43  ;;  %v858_v40 = vld [vmem:[%s4016_s3 + $0x7f0] sm:$0xff]  ;;  %v1219_v43 = vld [vmem:[%s4018_s5 + $0x188] sm:$0xff] }
 0x178   :  { %1909 = vmatpush1.bf16.msra.mxu0 %v1908_v51  ;;  %2037 = vmatpush1.bf16.msra.mxu1 %v2036_v52  ;;  %v831_v51 = vld [vmem:[%s4016_s3 + $0x718] sm:$0xff] }
 0x179   :  { %1911 = vmatprep.subr.bf16.mxu0 %v1910_v55  ;;  %2039 = vmatprep.subr.bf16.mxu1 %v2038_v56  ;;  %v835_v52 = vld [vmem:[%s4016_s3 + $0x738] sm:$0xff]  ;;  %v828_v55 = vld [vmem:[%s4016_s3 + $0x700] sm:$0xff] }
 0x17a   :  { %v832_v56 = vld [vmem:[%s4016_s3 + $0x720] sm:$0xff]  ;;  %v2058_v58 = vpack.c.bf16 %v835_v52, %v831_v51  ;;  %v1203_v52 = vld [vmem:[%s4018_s5 + $0x108] sm:$0xff] }
 0x17b   :  { %v1932_v1 = vpack.c.bf16 %v832_v56, %v828_v55  ;;  %v1202_v51 = vld [vmem:[%s4018_s5 + $0x100] sm:$0xff]  ;;  %v1221_v55 = vld [vmem:[%s4018_s5 + $0x198] sm:$0xff] }
 0x17c   :  { %1913 = vmatpush1.bf16.msra.mxu0 %v1912_v63  ;;  %2041 = vmatpush1.bf16.msra.mxu1 %v2040_v0  ;;  %v839_v63 = vld [vmem:[%s4016_s3 + $0x758] sm:$0xff] }
 0x17d   :  { %1915 = vmatprep.subr.bf16.mxu0 %v1914_v3  ;;  %2043 = vmatprep.subr.bf16.mxu1 %v2042_v4  ;;  %v843_v0 = vld [vmem:[%s4016_s3 + $0x778] sm:$0xff]  ;;  %v836_v3 = vld [vmem:[%s4016_s3 + $0x740] sm:$0xff] }
 0x17e   :  { %v840_v4 = vld [vmem:[%s4016_s3 + $0x760] sm:$0xff]  ;;  %v2062_v6 = vpack.c.bf16 %v843_v0, %v839_v63  ;;  %v1204_v63 = vld [vmem:[%s4018_s5 + $0x110] sm:$0xff]  ;;  %v1205_v0 = vld [vmem:[%s4018_s5 + $0x118] sm:$0xff] }
 0x17f   :  { %v1936_v18 = vpack.c.bf16 %v840_v4, %v836_v3  ;;  %v1222_v3 = vld [vmem:[%s4018_s5 + $0x1a0] sm:$0xff]  ;;  %v1223_v4 = vld [vmem:[%s4018_s5 + $0x1a8] sm:$0xff] }
 0x180   :  { %1917 = vmatpush1.bf16.msra.mxu0 %v1916_v16  ;;  %2045 = vmatpush1.bf16.msra.mxu1 %v2044_v17  ;;  %v847_v16 = vld [vmem:[%s4016_s3 + $0x798] sm:$0xff]  ;;  %v2114_v10 = vpack.c.bf16 %v1223_v4, %v1222_v3  ;;  %v1200_v4 = vld [vmem:[%s4018_s5 + $0xf0] sm:$0xff] }
 0x181   :  { %1919 = vmatprep.subr.bf16.mxu0 %v1918_v20  ;;  %2047 = vmatprep.subr.bf16.mxu1 %v2046_v21  ;;  %v851_v17 = vld [vmem:[%s4016_s3 + $0x7b8] sm:$0xff]  ;;  %v844_v20 = vld [vmem:[%s4016_s3 + $0x780] sm:$0xff] }
 0x182   :  { %v848_v21 = vld [vmem:[%s4016_s3 + $0x7a0] sm:$0xff]  ;;  %v2066_v25 = vpack.c.bf16 %v851_v17, %v847_v16  ;;  %v1207_v17 = vld [vmem:[%s4018_s5 + $0x128] sm:$0xff] }
 0x183   :  { %v1940_v32 = vpack.c.bf16 %v848_v21, %v844_v20  ;;  %v1206_v16 = vld [vmem:[%s4018_s5 + $0x120] sm:$0xff]  ;;  %v1224_v20 = vld [vmem:[%s4018_s5 + $0x1b0] sm:$0xff]  ;;  %v1225_v21 = vld [vmem:[%s4018_s5 + $0x1b8] sm:$0xff] }
 0x184   :  { %1921 = vmatpush1.bf16.msra.mxu0 %v1920_v29  ;;  %2049 = vmatpush1.bf16.msra.mxu1 %v2048_v30  ;;  %v857_v29 = vld [vmem:[%s4016_s3 + $0x7e8] sm:$0xff]  ;;  %v855_v30 = vld [vmem:[%s4016_s3 + $0x7d8] sm:$0xff] }
 0x185   :  { %1923 = vmatprep.subr.bf16.mxu0 %v1922_v33  ;;  %2051 = vmatprep.subr.bf16.mxu1 %v2050_v34  ;;  %v2068_v33 = vpack.c.bf16 %v850_v27, %v846_v26  ;;  %v852_v34 = vld [vmem:[%s4016_s3 + $0x7c0] sm:$0xff]  ;;  %v1942_v37 = vpack.c.bf16 %v857_v29, %v853_v28  ;;  %v2070_v38 = vpack.c.bf16 %v859_v31, %v855_v30  ;;  %v1176_v26 = vld [vmem:[%s4018_s5 + $0x30] sm:$0xff]  ;;  %v1177_v27 = vld [vmem:[%s4018_s5 + $0x38] sm:$0xff] }
 0x186   :  { %v1944_v44 = vpack.c.bf16 %v856_v35, %v852_v34  ;;  %v2118_v29 = vpack.c.bf16 %v1225_v21, %v1224_v20  ;;  %v1208_v30 = vld [vmem:[%s4018_s5 + $0x130] sm:$0xff]  ;;  %v1209_v31 = vld [vmem:[%s4018_s5 + $0x138] sm:$0xff]  ;;  %v1226_v34 = vld [vmem:[%s4018_s5 + $0x1c0] sm:$0xff]  ;;  %v2088_v36 = vpack.c.bf16 %v1177_v27, %v1176_v26 }
 0x187   :  { %v1227_v35 = vld [vmem:[%s4018_s5 + $0x1c8] sm:$0xff]  ;;  %v860_v21 = vld [vmem:[%s4019_s4] sm:$0xf] }
 0x188   :  { %1925 = vmatpush1.bf16.msra.mxu0 %v1924_v41  ;;  %2053 = vmatpush1.bf16.msra.mxu1 %v2052_v42  ;;  %v1186_v41 = vld [vmem:[%s4018_s5 + $0x80] sm:$0xff]  ;;  %v869_v26 = vrot.slane %v860_v21, %v302_v14  ;;  %v877_v27 = vrot.slane %v860_v21, %v310_v15  ;;  %v1383_v14 = vld [vmem:[%s4020_s7 + $0x8] sm:$0xff] }
 0x189   :  { %1927 = vmatprep.subr.bf16.mxu0 %v1926_v45  ;;  %2055 = vmatprep.subr.bf16.mxu1 %v2054_v46  ;;  %v1218_v42 = vld [vmem:[%s4018_s5 + $0x180] sm:$0xff]  ;;  %v2072_v45 = vpack.c.bf16 %v858_v40, %v854_v39  ;;  %v2074_v49 = vpack.c.bf16 %v1187_v13, %v1186_v41  ;;  %v1179_v39 = vld [vmem:[%s4018_s5 + $0x48] sm:$0xff]  ;;  %v2122_v41 = vpack.c.bf16 %v1227_v35, %v1226_v34 }
 0x18a   :  { %v1170_v46 = vld [vmem:[%s4018_s5] sm:$0xff]  ;;  %v2106_v50 = vpack.c.bf16 %v1219_v43, %v1218_v42  ;;  %v1211_v42 = vld [vmem:[%s4018_s5 + $0x148] sm:$0xff]  ;;  %v1196_v43 = vld [vmem:[%s4018_s5 + $0xd0] sm:$0xff]  ;;  %v2139_v15 = vpack.c.bf16 %v1383_v14, %v1382_v11 }
 0x18b   :  { %v2076_v56 = vpack.c.bf16 %v1171_v47, %v1170_v46  ;;  %v1210_v13 = vld [vmem:[%s4018_s5 + $0x140] sm:$0xff]  ;;  %v1229_v46 = vld [vmem:[%s4018_s5 + $0x1d8] sm:$0xff] }
 0x18c   :  { %1929 = vmatpush1.bf16.msra.mxu0 %v1928_v53  ;;  %2057 = vmatpush1.bf16.msra.mxu1 %v2056_v54  ;;  %v1188_v53 = vld [vmem:[%s4018_s5 + $0x90] sm:$0xff]  ;;  %v2124_v48 = vpack.c.bf16 %v1211_v42, %v1210_v13  ;;  %v2165_v13 = vmov 0.0   ;;  %v14_v42 = vstv %s4021_s8 }
 0x18d   :  { %1931 = vmatprep.subr.bf16.mxu0 %v1930_v57  ;;  %2059 = vmatprep.subr.bf16.mxu1 %v2058_v58  ;;  %v1220_v54 = vld [vmem:[%s4018_s5 + $0x190] sm:$0xff]  ;;  %v2108_v57 = vpack.c.bf16 %v1203_v52, %v1202_v51  ;;  %v2078_v61 = vpack.c.bf16 %v1189_v22, %v1188_v53  ;;  %v1213_v22 = vld [vmem:[%s4018_s5 + $0x158] sm:$0xff]  ;;  %15 = vst [vmem:[#allocation2] sm:$0x1] %v14_v42 }
 0x18e   :  { %v1172_v58 = vld [vmem:[%s4018_s5 + $0x10] sm:$0xff]  ;;  %v2110_v62 = vpack.c.bf16 %v1221_v55, %v1220_v54  ;;  %v1198_v54 = vld [vmem:[%s4018_s5 + $0xe0] sm:$0xff]  ;;  %v1199_v55 = vld [vmem:[%s4018_s5 + $0xe8] sm:$0xff] }
 0x18f   :  { %v1212_v53 = vld [vmem:[%s4018_s5 + $0x150] sm:$0xff] }
 0x190   :  { %1933 = vmatpush1.bf16.msra.mxu0 %v1932_v1  ;;  %2061 = vmatpush1.bf16.msra.mxu1 %v2060_v2  ;;  %v1190_v1 = vld [vmem:[%s4018_s5 + $0xa0] sm:$0xff]  ;;  %v1191_v2 = vld [vmem:[%s4018_s5 + $0xa8] sm:$0xff] }
 0x191   :  { %1935 = vmatprep.subr.bf16.mxu0 %v1934_v5  ;;  %2063 = vmatprep.subr.bf16.mxu1 %v2062_v6  ;;  %v2080_v5 = vpack.c.bf16 %v1173_v59, %v1172_v58  ;;  %v2112_v6 = vpack.c.bf16 %v1205_v0, %v1204_v63  ;;  %v2082_v9 = vpack.c.bf16 %v1191_v2, %v1190_v1  ;;  %v1183_v63 = vld [vmem:[%s4018_s5 + $0x68] sm:$0xff]  ;;  %v1214_v0 = vld [vmem:[%s4018_s5 + $0x160] sm:$0xff] }
 0x192   :  { %v2128_v59 = vpack.c.bf16 %v1213_v22, %v1212_v53  ;;  %v1215_v2 = vld [vmem:[%s4018_s5 + $0x168] sm:$0xff] }
 0x193   :  { %v2132_v3 = vpack.c.bf16 %v1215_v2, %v1214_v0 }
 0x194   :  { %1937 = vmatpush1.bf16.msra.mxu0 %v1936_v18  ;;  %2065 = vmatpush1.bf16.msra.mxu1 %v2064_v19  ;;  %v1192_v18 = vld [vmem:[%s4018_s5 + $0xb0] sm:$0xff]  ;;  %v1193_v19 = vld [vmem:[%s4018_s5 + $0xb8] sm:$0xff]  ;;  %v1474_v53 = vld [vmem:[#allocation2] ss:$0 sm:$0xff] }
 0x195   :  { %1939 = vmatprep.subr.bf16.mxu0 %v1938_v24  ;;  %2067 = vmatprep.subr.bf16.mxu1 %v2066_v25  ;;  %v2084_v24 = vpack.c.bf16 %v1175_v8, %v1174_v7  ;;  %v2116_v25 = vpack.c.bf16 %v1207_v17, %v1206_v16  ;;  %v2086_v28 = vpack.c.bf16 %v1193_v19, %v1192_v18  ;;  %v1233_v8 = vld [vmem:[%s4018_s5 + $0x1f8] sm:$0xff]  ;;  %v1216_v18 = vld [vmem:[%s4018_s5 + $0x170] sm:$0xff] }
 0x196   :  { %v1217_v19 = vld [vmem:[%s4018_s5 + $0x178] sm:$0xff] }
 0x197   :  { %v2136_v20 = vpack.c.bf16 %v1217_v19, %v1216_v18 }
 0x198   :  { %1941 = vmatpush1.bf16.msra.mxu0 %v1940_v32  ;;  %2069 = vmatpush1.bf16.msra.mxu1 %v2068_v33  ;;  %v1194_v32 = vld [vmem:[%s4018_s5 + $0xc0] sm:$0xff]  ;;  %v1195_v33 = vld [vmem:[%s4018_s5 + $0xc8] sm:$0xff] }
 0x199   :  { %1943 = vmatprep.subr.bf16.mxu0 %v1942_v37  ;;  %2071 = vmatprep.subr.bf16.mxu1 %v2070_v38  ;;  %v2120_v37 = vpack.c.bf16 %v1209_v31, %v1208_v30  ;;  %v1178_v38 = vld [vmem:[%s4018_s5 + $0x40] sm:$0xff]  ;;  %v2090_v40 = vpack.c.bf16 %v1195_v33, %v1194_v32 }
 0x19a   :  { %v2092_v47 = vpack.c.bf16 %v1179_v39, %v1178_v38  ;;  %v1384_v39 = vld [vmem:[%s4020_s7 + $0x10] sm:$0xff] }
 0x19c   :  { %1945 = vmatpush1.bf16.msra.mxu0 %v1944_v44  ;;  %2073 = vmatpush1.bf16.msra.mxu1 %v2072_v45  ;;  %v1197_v44 = vld [vmem:[%s4018_s5 + $0xd8] sm:$0xff]  ;;  %v1228_v45 = vld [vmem:[%s4018_s5 + $0x1d0] sm:$0xff] }
 0x19d   :  { %2075 = vmatprep.subr.bf16.mxu0 %v2074_v49  ;;  %2107 = vmatprep.subr.bf16.mxu1 %v2106_v50  ;;  %v1180_v49 = vld [vmem:[%s4018_s5 + $0x50] sm:$0xff]  ;;  %v1181_v50 = vld [vmem:[%s4018_s5 + $0x58] sm:$0xff]  ;;  %v2094_v51 = vpack.c.bf16 %v1197_v44, %v1196_v43  ;;  %v2126_v52 = vpack.c.bf16 %v1229_v46, %v1228_v45  ;;  %v1473_v45 = vld [vmem:[%s4022_s6] ss:$0 sm:$0xff] }
 0x19e   :  { %v2096_v58 = vpack.c.bf16 %v1181_v50, %v1180_v49 }
 0x19f   :  { %1018 = vmatmul.mubr.f32.vlgmr.msra.gmra.mrb[2].mxu0 %v602_v60  ;;  %1160 = vmatmul.mubr.f32.vlgmr.msra.gmra.mrb[2].mxu1 %v602_v60  ;;  %v2098_v60 = vpack.c.bf16 %v1199_v55, %v1198_v54 }
 0x1a0   :  { %2077 = vmatpush3.bf16.msra.mxu0 %v2076_v56  ;;  %2109 = vmatpush3.bf16.msra.mxu1 %v2108_v57  ;;  %v1230_v56 = vld [vmem:[%s4018_s5 + $0x1e0] sm:$0xff]  ;;  %v1231_v57 = vld [vmem:[%s4018_s5 + $0x1e8] sm:$0xff] }
 0x1a1   :  { %2079 = vmatprep.subr.bf16.mxu0 %v2078_v61  ;;  %2111 = vmatprep.subr.bf16.mxu1 %v2110_v62  ;;  %v2130_v61 = vpack.c.bf16 %v1231_v57, %v1230_v56  ;;  %v1182_v62 = vld [vmem:[%s4018_s5 + $0x60] sm:$0xff] }
 0x1a2   :  { %v2100_v1 = vpack.c.bf16 %v1183_v63, %v1182_v62 }
 0x1a4   :  { %2081 = vmatpush3.bf16.msra.mxu0 %v2080_v5  ;;  %2113 = vmatpush3.bf16.msra.mxu1 %v2112_v6  ;;  %v1201_v5 = vld [vmem:[%s4018_s5 + $0xf8] sm:$0xff]  ;;  %v1232_v6 = vld [vmem:[%s4018_s5 + $0x1f0] sm:$0xff] }
 0x1a5   :  { %2083 = vmatprep.subr.bf16.mxu0 %v2082_v9  ;;  %2115 = vmatprep.subr.bf16.mxu1 %v2114_v10  ;;  %v2102_v7 = vpack.c.bf16 %v1201_v5, %v1200_v4  ;;  %v1184_v9 = vld [vmem:[%s4018_s5 + $0x70] sm:$0xff]  ;;  %v1185_v10 = vld [vmem:[%s4018_s5 + $0x78] sm:$0xff]  ;;  %v2134_v16 = vpack.c.bf16 %v1233_v8, %v1232_v6 }
 0x1a6   :  { %v2104_v17 = vpack.c.bf16 %v1185_v10, %v1184_v9 }
 0x1a8   :  { %2085 = vmatpush3.bf16.msra.mxu0 %v2084_v24  ;;  %2117 = vmatpush3.bf16.msra.mxu1 %v2116_v25  ;;  %v865_v24 = vrot.slane %v860_v21, %v298_v12  ;;  %v873_v25 = vrot.slane %v860_v21, %v306_v23  ;;  %v2163_v23 = vmov 0.0|0.0  }
 0x1a9   :  { %2087 = vmatprep.subr.bf16.mxu0 %v2086_v28  ;;  %2119 = vmatprep.subr.bf16.mxu1 %v2118_v29 }
 0x1ac   :  { %2089 = vmatpush3.bf16.msra.mxu0 %v2088_v36  ;;  %2121 = vmatpush3.bf16.msra.mxu1 %v2120_v37 }
 0x1ad   :  { %2091 = vmatprep.subr.bf16.mxu0 %v2090_v40  ;;  %2123 = vmatprep.subr.bf16.mxu1 %v2122_v41  ;;  %v1385_v40 = vld [vmem:[%s4020_s7 + $0x18] sm:$0xff] }
 0x1ae   :  { %v2142_v41 = vpack.c.bf16 %v1385_v40, %v1384_v39 }
 0x1b0   :  { %2093 = vmatpush3.bf16.msra.mxu0 %v2092_v47  ;;  %2125 = vmatpush3.bf16.msra.mxu1 %v2124_v48 }
 0x1b1   :  { %2095 = vmatprep.subr.bf16.mxu0 %v2094_v51  ;;  %2127 = vmatprep.subr.bf16.mxu1 %v2126_v52 }
 0x1b4   :  { %2097 = vmatpush3.bf16.msra.mxu0 %v2096_v58  ;;  %2129 = vmatpush3.bf16.msra.mxu1 %v2128_v59 }
 0x1b5   :  { %2099 = vmatprep.subr.bf16.mxu0 %v2098_v60  ;;  %2131 = vmatprep.subr.bf16.mxu1 %v2130_v61 }
 0x1b8   :  { %2101 = vmatpush3.bf16.msra.mxu0 %v2100_v1  ;;  %2133 = vmatpush3.bf16.msra.mxu1 %v2132_v3 }
 0x1b9   :  { %2103 = vmatprep.subr.bf16.mxu0 %v2102_v7  ;;  %2135 = vmatprep.subr.bf16.mxu1 %v2134_v16 }
 0x1bc   :  { %2105 = vmatpush3.bf16.msra.mxu0 %v2104_v17  ;;  %2137 = vmatpush3.bf16.msra.mxu1 %v2136_v20 }
 0x1bd   :  { %2138 = vmatprep.subr.bf16.mxu0 %v2163_v23 }
 0x272   :  { %v1019_v28 = vpop.f32.mrb[2].mxu0  ;;  %v1161_v29 = vpop.f32.mrb[2].mxu1 }
 0x273   :  { %v2148_v30 = vadd.f32 %v1019_v28, %v865_v24  ;;  %v2150_v31 = vadd.f32 %v1161_v29, %v873_v25  ;;  %v1021_v32 = vpop.f32.mrb[3].mxu0  ;;  %v1163_v33 = vpop.f32.mrb[3].mxu1 }
 0x274   :  { %v2149_v34 = vadd.f32 %v1021_v32, %v869_v26  ;;  %v2151_v35 = vadd.f32 %v1163_v33, %v877_v27 }
 0x275   :  { %v1166_v12 = vmax.f32 %v2148_v30, 0.0  ;;  %v1168_v38 = vmax.f32 %v2150_v31, 0.0 }
 0x276   :  { %v1167_v36 = vmax.f32 %v2149_v34, 0.0  ;;  %v1169_v37 = vmax.f32 %v2151_v35, 0.0 }
 0x278   :  { %1305 = vmatprep.mubr.f32.mxu0 %v1167_v36  ;;  %1375 = vmatprep.mubr.f32.mxu1 %v1169_v37 }
 0x279   :  { %1306 = vmatmul.mubr.f32.vlgmr.msra.gmra.mrb[4].mxu0 %v1166_v12  ;;  %1376 = vmatmul.mubr.f32.vlgmr.msra.gmra.mrb[4].mxu1 %v1168_v38 }
 0x27a   :  { %2140 = vmatpush3.bf16.msra.mxu0 %v2139_v15  ;;  %1559 = vmatprep.mubr.msk.f32.mxu0 %vm2164_vm0, %v2165_v13 }
 0x27b   :  { %2141 = vmatprep.subr.bf16.mxu0 %v2163_v23 }
 0x27e   :  { %2143 = vmatpush3.bf16.msra.mxu0 %v2142_v41 }
 0x34c   :  { %v1508_v43 = vpop.f32.mrb[4].mxu0  ;;  %v1543_v44 = vpop.f32.mrb[4].mxu1 }
 0x34d   :  { %v1509_v46 = vpop.f32.mrb[5].mxu0  ;;  %v1544_v47 = vpop.f32.mrb[5].mxu1 }
 0x34e   :  { %v1510_v48 = vadd.f32 %v1509_v46, %v1508_v43  ;;  %v1545_v49 = vadd.f32 %v1544_v47, %v1543_v44 }
 0x350   :  { %v1308_v50 = vadd.f32 %v1510_v48, %v1473_v45 }
 0x352   :  { %v1378_v51 = vadd.f32 %v1545_v49, %v1308_v50 }
 0x354   :  { %v1381_v52 = vmax.f32 %v1378_v51, 0.0 }
 0x356   :  { %1560 = vmatmul.mubr.msk.f32.vlgmr.msra.gmra.mrb[6].mxu0 %vm1393_vm1, %v1381_v52 }
 0x429   :  { %v1463_v22 = vpop.f32.mrb[6].mxu0 }
 0x42a   :  { %v1464_v54 = vadd.f32 %v1474_v53, %v1463_v22  ;;  %v1561_v55 = vpop.f32.mrb[7].mxu0 }
 0x42c   :  { %1468 = vst.msk [vmem:[%s4023_s9] sm:$0xff] %vm1467_vm2, %v1464_v54 }

</bundles_post_ra>
